<compile_context>
chip_gen: v7x
topology: tpu7x:2x2x1
jax: 0.10.0
libtpu: 0.0.40
codegen_flags: <defaults>
</compile_context>

<pallas_src>
import functools

import jax
import jax.numpy as jnp
from jax.experimental import pallas as pl
from jax.experimental.pallas import tpu as pltpu


# ----------------------------------------------------------------------------
# Kernel
# ----------------------------------------------------------------------------
def _snp_encoder_kernel(n_layers, pack, *refs):
    """refs = (x_ref, [W_0, b_0, ..., W_{L-1}, b_{L-1}], out_ref).

    Layers 0..L-2 are (folded Linear+BN) followed by ReLU; layer L-1 is the
    output Linear followed by row-wise L2 normalization.  If pack > 1 the
    normalized (block_b, out_dim) tile is repacked row-major to
    (block_b//pack, out_dim*pack) so the store is lane-dense.
    """
    x_ref = refs[0]
    out_ref = refs[-1]
    params = refs[1:-1]

    h = x_ref[...]
    for i in range(n_layers):
        w_ref = params[2 * i]
        b_ref = params[2 * i + 1]
        a = h if h.dtype == w_ref.dtype else h.astype(w_ref.dtype)
        # MXU matmul with f32 accumulation; bias add in f32.
        h = jnp.dot(a, w_ref[...], preferred_element_type=jnp.float32)
        h = h + b_ref[...].astype(jnp.float32)
        if i < n_layers - 1:
            h = jnp.maximum(h, 0.0)                      # ReLU (f32 VPU path, v5e-safe)
            h = h.astype(params[2 * (i + 1)].dtype)      # carry bf16 between layers

    # F.normalize(z, dim=1, eps=1e-12): z / max(||z||, eps)
    #   == z * rsqrt(max(sum(z^2), eps^2))  -> single EUP rsqrt, no vector divide.
    sumsq = jnp.sum(h * h, axis=1, keepdims=True)
    z = h * jax.lax.rsqrt(jnp.maximum(sumsq, 1e-24))

    if pack > 1:
        bm, d = z.shape
        z = z.reshape(bm // pack, d * pack)  # free row-major repack -> 128-lane store
    out_ref[...] = z.astype(out_ref.dtype)


# ----------------------------------------------------------------------------
# Hardware query / tile selection helpers
# ----------------------------------------------------------------------------
def _tpu_vmem_budget_and_cores():
    """Return (usable VMEM budget bytes, #TensorCores sharing the batch grid)."""
    try:
        info = pltpu.get_tpu_info()
        vmem = int(getattr(info, "vmem_capacity_bytes", 64 << 20))
    except Exception:
        return 48 << 20, 1  # conservative default: safe on every generation
    budget = int(vmem * 3 // 4)               # 48 MiB on 64-MiB v7x, 96 MiB on v5e/v6e
    num_tc = 2 if vmem <= (64 << 20) else 1   # v7x: 2 TCs/chip, 64 MiB VMEM per TC
    return budget, num_tc


def _vmem_need(block_b, x_dim, out_dim, max_width, param_bytes,
               x_itemsize, out_itemsize, single_buffer_params):
    """Explicit VMEM accounting for one grid step."""
    p_buf = 1 if single_buffer_params else 2
    act = 3 * block_b * max_width * 4            # live f32 activations + bf16 dot copies
    xin = 2 * block_b * x_dim * x_itemsize       # double-buffered streamed input tile
    out = 2 * block_b * out_dim * out_itemsize   # double-buffered streamed output tile
    return p_buf * param_bytes + act + xin + out + (2 << 20)  # +2 MiB slack


def _pick_block_b(B, need_fn, budget, num_tc):
    cands = sorted({B} | {c for c in (1024, 512, 256, 128, 64, 32, 16, 8) if c <= B},
                   reverse=True)
    valid = [c for c in cands if B % c == 0 and (c % 8 == 0 or c == B)]
    fits = [c for c in valid if need_fn(c) <= budget] or valid
    if num_tc >= 2:
        # Keep at least num_tc grid steps so the "parallel" axis spans all cores.
        multi = [c for c in fits if (B // c) >= num_tc and (B // c) % num_tc == 0]
        if multi:
            return multi[0]
    return fits[0]


# ----------------------------------------------------------------------------
# Wrapper
# ----------------------------------------------------------------------------
def snp_encoder_forward(x, flat_params, out_dim, *, block_b=None):
    """Run the whole MLP in one batch-tiled Pallas kernel.

    flat_params: [W_0 (in,out), b_0 (1,out), ..., W_out, b_out] with BN
    already folded in (see prepare_params).
    """
    B, x_dim = x.shape
    n_layers = len(flat_params) // 2
    out_dtype = jnp.float32

    widths = [x_dim, out_dim] + [int(w.shape[1]) for w in flat_params[0::2]]
    max_width = max(widths)
    param_bytes = sum(int(p.size) * p.dtype.itemsize for p in flat_params)

    budget, num_tc = _tpu_vmem_budget_and_cores()

    # Resident-weight design: all folded params live in VMEM for the whole call.
    # TODO(synk): for configs whose folded weights exceed the budget, tile the
    # widest layer over its N dim as an extra "arbitrary" grid axis (or stream
    # weight chunks with pltpu.emit_pipeline) instead of failing.
    if 2 * param_bytes + (4 << 20) > budget:
        raise NotImplementedError("folded weights do not fit resident in VMEM")

    def need(bb):
        return _vmem_need(bb, x_dim, out_dim, max_width, param_bytes,
                          x.dtype.itemsize, jnp.dtype(out_dtype).itemsize, True)

    if block_b is None:
        block_b = _pick_block_b(B, need, budget, num_tc)
    assert B % block_b == 0, "batch must be divisible by the batch tile"
    assert block_b % 8 == 0 or block_b == B, "batch tile must respect sublane tiling"
    grid = (B // block_b,)

    # Lane-dense output packing: (B, out_dim) -> (B//pack, out_dim*pack) is a
    # free row-major reshape when out_dim divides 128.
    pack = 128 // out_dim if (out_dim < 128 and 128 % out_dim == 0) else 1
    if pack > 1 and not (B % pack == 0 and block_b % pack == 0
                         and ((block_b // pack) % 8 == 0 or block_b == B)):
        pack = 1

    # Advisory cost estimate so XLA can schedule around the custom call.
    flops = 2 * B * sum(int(w.shape[0]) * int(w.shape[1]) for w in flat_params[0::2])
    bytes_accessed = int(x.size) * x.dtype.itemsize + param_bytes + B * out_dim * 4
    cost = pl.CostEstimate(flops=flops, transcendentals=B,
                           bytes_accessed=bytes_accessed)

    def build(pack_out, single_buffer_params):
        in_specs = [pl.BlockSpec((block_b, x_dim), lambda i: (i, 0))]
        for p in flat_params:
            if single_buffer_params:
                in_specs.append(pl.BlockSpec(p.shape, lambda i: (0, 0),
                                             pipeline_mode=pl.Buffered(1)))
            else:
                in_specs.append(pl.BlockSpec(p.shape, lambda i: (0, 0)))
        if pack_out > 1:
            out_shape = jax.ShapeDtypeStruct((B // pack_out, out_dim * pack_out),
                                             out_dtype)
            out_specs = pl.BlockSpec((block_b // pack_out, out_dim * pack_out),
                                     lambda i: (i, 0))
        else:
            out_shape = jax.ShapeDtypeStruct((B, out_dim), out_dtype)
            out_specs = pl.BlockSpec((block_b, out_dim), lambda i: (i, 0))
        return pl.pallas_call(
            functools.partial(_snp_encoder_kernel, n_layers, pack_out),
            out_shape=out_shape,
            grid=grid,
            in_specs=in_specs,
            out_specs=out_specs,
            compiler_params=pltpu.CompilerParams(
                dimension_semantics=("parallel",),
                vmem_limit_bytes=int(budget),
            ),
            cost_estimate=cost,
        )

    # Try the most optimized configuration first; fall back to plainer ones so
    # the kernel always runs (e.g. if Buffered(1) or the in-kernel lane repack
    # is unsupported on this JAX/Mosaic build).
    configs = ([(pack, True), (pack, False)] if pack > 1 else []) + [(1, True), (1, False)]
    seen = set()
    configs = [c for c in configs if not (c in seen or seen.add(c))]

    last_err = None
    for pk, sb in configs:
        try:
            z = build(pk, sb)(x, *flat_params)
        except Exception as e:  # noqa: BLE001 - fallback chain, correctness re-checked by caller
            last_err = e
            continue
        return z.reshape(B, out_dim) if pk > 1 else z
    raise last_err


# ----------------------------------------------------------------------------
# Parameter construction (PyTorch layout) + BN folding / dtype prep
# ----------------------------------------------------------------------------
def init_torch_like_params(key, x_dim, fc_dims, out_dim):
    """Deterministic synthetic parameters in PyTorch layout."""
    hidden = []
    dims = [x_dim] + list(fc_dims)
    for i in range(len(fc_dims)):
        key, k_w, k_b, k_g, k_be, k_m, k_v = jax.random.split(key, 7)
        fan_in, fan_out = dims[i], dims[i + 1]
        bound = 1.0 / float(fan_in) ** 0.5
        hidden.append(dict(
            W=jax.random.uniform(k_w, (fan_out, fan_in), jnp.float32, -bound, bound),
            b=jax.random.uniform(k_b, (fan_out,), jnp.float32, -bound, bound),
            gamma=1.0 + 0.1 * jax.random.normal(k_g, (fan_out,), jnp.float32),
            beta=0.1 * jax.random.normal(k_be, (fan_out,), jnp.float32),
            running_mean=0.1 * jax.random.normal(k_m, (fan_out,), jnp.float32),
            running_var=1.0 + 0.1 * jnp.abs(jax.random.normal(k_v, (fan_out,), jnp.float32)),
        ))
    key, k_w, k_b = jax.random.split(key, 3)
    fan_in = fc_dims[-1]
    bound = 1.0 / float(fan_in) ** 0.5
    W_out = jax.random.uniform(k_w, (out_dim, fan_in), jnp.float32, -bound, bound)
    b_out = jax.random.uniform(k_b, (out_dim,), jnp.float32, -bound, bound)
    return hidden, (W_out, b_out)


def prepare_params(hidden, out_layer, weight_dtype=jnp.bfloat16, eps=1e-5):
    """Fold eval-mode BN into the preceding Linear, transpose W to (in, out),
    cast weights to `weight_dtype` (biases stay f32)."""
    flat = []
    for layer in hidden:
        s = layer["gamma"] / jnp.sqrt(layer["running_var"] + eps)
        t = layer["beta"] - layer["running_mean"] * s
        W_folded = (layer["W"].T * s[None, :]).astype(weight_dtype)   # (in, out)
        b_folded = (layer["b"] * s + t).reshape(1, -1).astype(jnp.float32)
        flat += [W_folded, b_folded]
    W_out, b_out = out_layer
    flat += [W_out.T.astype(weight_dtype), b_out.reshape(1, -1).astype(jnp.float32)]
    return flat


# ----------------------------------------------------------------------------
# References
# ----------------------------------------------------------------------------
def reference_forward_prepped(x, flat_params):
    """Pure-JAX reference with the same prepped (folded, bf16) params and the
    same numerics as the kernel — tight-tolerance check."""
    n_layers = len(flat_params) // 2
    h = x.astype(jnp.float32)
    for i in range(n_layers):
        W, b = flat_params[2 * i], flat_params[2 * i + 1]
        h = jnp.dot(h.astype(W.dtype), W, preferred_element_type=jnp.float32) \
            + b.astype(jnp.float32)
        if i < n_layers - 1:
            h = jnp.maximum(h, 0.0)
    sumsq = jnp.sum(h * h, axis=1, keepdims=True)
    return h * jax.lax.rsqrt(jnp.maximum(sumsq, 1e-24))


def reference_forward_torch(x, hidden, out_layer, eps=1e-5):
    """f32, unfolded reference matching the PyTorch module semantics
    (eval-mode BN) — loose-tolerance check of BN folding + bf16 cast."""
    h = x
    for layer in hidden:
        h = h @ layer["W"].T + layer["b"]
        h = (h - layer["running_mean"]) / jnp.sqrt(layer["running_var"] + eps)
        h = h * layer["gamma"] + layer["beta"]
        h = jnp.maximum(h, 0.0)
    W_out, b_out = out_layer
    z = h @ W_out.T + b_out
    norm = jnp.sqrt(jnp.sum(z * z, axis=1, keepdims=True))
    return z / jnp.maximum(norm, 1e-12)


# ----------------------------------------------------------------------------
if __name__ == "__main__":
    # Small shapes consistent with the module's forward (x: (batch, x_dim)).
    batch, x_dim, out_dim = 256, 32, 16
    fc_dims = [64, 64]

    key = jax.random.PRNGKey(0)
    key, kx = jax.random.split(key)
    x = jax.random.normal(kx, (batch, x_dim), jnp.float32)

    hidden, out_layer = init_torch_like_params(key, x_dim, fc_dims, out_dim)
    flat_params = prepare_params(hidden, out_layer, weight_dtype=jnp.bfloat16)

    z_ref = reference_forward_prepped(x, flat_params)
    z_torch = reference_forward_torch(x, hidden, out_layer)

    # 1) auto-selected batch tile (largest that fits the VMEM accounting,
    #    clamped to keep both TensorCores busy on 2-TC chips).
    z_auto = jax.block_until_ready(snp_encoder_forward(x, flat_params, out_dim))
    # 2) explicit small tile -> multi-step grid, exercises the pipeline path.
    z_tiled = jax.block_until_ready(
        snp_encoder_forward(x, flat_params, out_dim, block_b=64))

    for z in (z_auto, z_tiled):
        assert z.shape == (batch, out_dim)
        # Tight check: kernel vs pure-JAX doing the identical folded/bf16 math.
        assert jnp.allclose(z, z_ref, atol=2e-5, rtol=1e-4), \
            "mismatch vs prepped JAX reference"
        # Loose check: kernel vs unfolded f32 PyTorch-style reference.
        assert jnp.allclose(z, z_torch, atol=5e-2, rtol=5e-2), \
            "mismatch vs torch-style reference"

    print("KERNEL_OK")
</pallas_src>

<mosaic_0001>
module attributes {stable_mosaic.version = 11 : i64} {
  func.func @_snp_encoder_kernel(%arg0: i32, %arg1: memref<256x32xf32, #tpu.memory_space<vmem>>, %arg2: memref<32x64xbf16, #tpu.memory_space<vmem>>, %arg3: memref<1x64xf32, #tpu.memory_space<vmem>>, %arg4: memref<64x64xbf16, #tpu.memory_space<vmem>>, %arg5: memref<1x64xf32, #tpu.memory_space<vmem>>, %arg6: memref<64x16xbf16, #tpu.memory_space<vmem>>, %arg7: memref<1x16xf32, #tpu.memory_space<vmem>>, %arg8: memref<32x128xf32, #tpu.memory_space<vmem>>) attributes {dimension_semantics = [#tpu.dimension_semantics<parallel>], iteration_bounds = array<i64: 1>, scalar_prefetch = 0 : i64, scratch_operands = 0 : i64, tpu.core_type = #tpu.core_type<tc>, window_params = [{transform_indices = @transform_0, window_bounds = array<i64: 256, 32>}, {pipeline_mode = #tpu.pipeline_mode<synchronous>, transform_indices = @transform_1, window_bounds = array<i64: 32, 64>}, {pipeline_mode = #tpu.pipeline_mode<synchronous>, transform_indices = @transform_2, window_bounds = array<i64: 1, 64>}, {pipeline_mode = #tpu.pipeline_mode<synchronous>, transform_indices = @transform_3, window_bounds = array<i64: 64, 64>}, {pipeline_mode = #tpu.pipeline_mode<synchronous>, transform_indices = @transform_4, window_bounds = array<i64: 1, 64>}, {pipeline_mode = #tpu.pipeline_mode<synchronous>, transform_indices = @transform_5, window_bounds = array<i64: 64, 16>}, {pipeline_mode = #tpu.pipeline_mode<synchronous>, transform_indices = @transform_6, window_bounds = array<i64: 1, 16>}, {transform_indices = @transform_7, window_bounds = array<i64: 32, 128>}]} {
    %c0 = arith.constant 0 : index
    %c0_0 = arith.constant 0 : index
    %0 = vector.load %arg1[%c0, %c0_0] : memref<256x32xf32, #tpu.memory_space<vmem>>, vector<256x32xf32>
    %1 = arith.truncf %0 : vector<256x32xf32> to vector<256x32xbf16>
    %c0_1 = arith.constant 0 : index
    %c0_2 = arith.constant 0 : index
    %2 = vector.load %arg2[%c0_1, %c0_2] : memref<32x64xbf16, #tpu.memory_space<vmem>>, vector<32x64xbf16>
    %cst = arith.constant dense<0.000000e+00> : vector<256x64xf32>
    %3 = tpu.matmul %1, %2, %cst {dimension_numbers = #tpu.dot_dimension_numbers<[1], [0], [0], [1], [0, 0, 1, 1], [], []>} : vector<256x32xbf16>, vector<32x64xbf16>, vector<256x64xf32> -> vector<256x64xf32>
    %c0_3 = arith.constant 0 : index
    %c0_4 = arith.constant 0 : index
    %4 = vector.load %arg3[%c0_3, %c0_4] : memref<1x64xf32, #tpu.memory_space<vmem>>, vector<1x64xf32>
    %5 = vector.broadcast %4 : vector<1x64xf32> to vector<256x64xf32>
    %6 = arith.addf %3, %5 : vector<256x64xf32>
    %cst_5 = arith.constant 0.000000e+00 : f32
    %7 = vector.broadcast %cst_5 : f32 to vector<256x64xf32>
    %8 = arith.maximumf %6, %7 : vector<256x64xf32>
    %9 = arith.truncf %8 : vector<256x64xf32> to vector<256x64xbf16>
    %c0_6 = arith.constant 0 : index
    %c0_7 = arith.constant 0 : index
    %10 = vector.load %arg4[%c0_6, %c0_7] : memref<64x64xbf16, #tpu.memory_space<vmem>>, vector<64x64xbf16>
    %cst_8 = arith.constant dense<0.000000e+00> : vector<256x64xf32>
    %11 = tpu.matmul %9, %10, %cst_8 {dimension_numbers = #tpu.dot_dimension_numbers<[1], [0], [0], [1], [0, 0, 1, 1], [], []>} : vector<256x64xbf16>, vector<64x64xbf16>, vector<256x64xf32> -> vector<256x64xf32>
    %c0_9 = arith.constant 0 : index
    %c0_10 = arith.constant 0 : index
    %12 = vector.load %arg5[%c0_9, %c0_10] : memref<1x64xf32, #tpu.memory_space<vmem>>, vector<1x64xf32>
    %13 = vector.broadcast %12 : vector<1x64xf32> to vector<256x64xf32>
    %14 = arith.addf %11, %13 : vector<256x64xf32>
    %cst_11 = arith.constant 0.000000e+00 : f32
    %15 = vector.broadcast %cst_11 : f32 to vector<256x64xf32>
    %16 = arith.maximumf %14, %15 : vector<256x64xf32>
    %17 = arith.truncf %16 : vector<256x64xf32> to vector<256x64xbf16>
    %c0_12 = arith.constant 0 : index
    %c0_13 = arith.constant 0 : index
    %18 = vector.load %arg6[%c0_12, %c0_13] : memref<64x16xbf16, #tpu.memory_space<vmem>>, vector<64x16xbf16>
    %cst_14 = arith.constant dense<0.000000e+00> : vector<256x16xf32>
    %19 = tpu.matmul %17, %18, %cst_14 {dimension_numbers = #tpu.dot_dimension_numbers<[1], [0], [0], [1], [0, 0, 1, 1], [], []>} : vector<256x64xbf16>, vector<64x16xbf16>, vector<256x16xf32> -> vector<256x16xf32>
    %c0_15 = arith.constant 0 : index
    %c0_16 = arith.constant 0 : index
    %20 = vector.load %arg7[%c0_15, %c0_16] : memref<1x16xf32, #tpu.memory_space<vmem>>, vector<1x16xf32>
    %21 = vector.broadcast %20 : vector<1x16xf32> to vector<256x16xf32>
    %22 = arith.addf %19, %21 : vector<256x16xf32>
    %23 = arith.mulf %22, %22 : vector<256x16xf32>
    %cst_17 = arith.constant dense<0.000000e+00> : vector<256xf32>
    %24 = vector.multi_reduction <add>, %23, %cst_17 [1] : vector<256x16xf32> to vector<256xf32>
    %25 = vector.shape_cast %24 : vector<256xf32> to vector<256x1xf32>
    %cst_18 = arith.constant 1.000000e-24 : f32
    %26 = vector.broadcast %cst_18 : f32 to vector<256x1xf32>
    %27 = arith.maximumf %25, %26 : vector<256x1xf32>
    %28 = math.rsqrt %27 : vector<256x1xf32>
    %29 = vector.broadcast %28 : vector<256x1xf32> to vector<256x16xf32>
    %30 = arith.mulf %22, %29 : vector<256x16xf32>
    %31 = vector.shape_cast %30 : vector<256x16xf32> to vector<32x128xf32>
    %c0_19 = arith.constant 0 : index
    %c0_20 = arith.constant 0 : index
    %32 = vector.load %arg8[%c0_19, %c0_20] : memref<32x128xf32, #tpu.memory_space<vmem>>, vector<32x128xf32>
    tpu.vector_store %arg8[%c0_19, %c0_20], %31 {strides = array<i32>} : memref<32x128xf32, #tpu.memory_space<vmem>>, vector<32x128xf32>,
    return
  }
  func.func @transform_0(%arg0: i32) -> (i32, i32) {
    %c0_i32 = arith.constant 0 : i32
    %c0_i32_0 = arith.constant 0 : i32
    return %arg0, %c0_i32 : i32, i32
  }
  func.func @transform_1(%arg0: i32) -> (i32, i32) {
    %c0_i32 = arith.constant 0 : i32
    %c0_i32_0 = arith.constant 0 : i32
    %c0_i32_1 = arith.constant 0 : i32
    return %c0_i32, %c0_i32_0 : i32, i32
  }
  func.func @transform_2(%arg0: i32) -> (i32, i32) {
    %c0_i32 = arith.constant 0 : i32
    %c0_i32_0 = arith.constant 0 : i32
    %c0_i32_1 = arith.constant 0 : i32
    return %c0_i32, %c0_i32_0 : i32, i32
  }
  func.func @transform_3(%arg0: i32) -> (i32, i32) {
    %c0_i32 = arith.constant 0 : i32
    %c0_i32_0 = arith.constant 0 : i32
    %c0_i32_1 = arith.constant 0 : i32
    return %c0_i32, %c0_i32_0 : i32, i32
  }
  func.func @transform_4(%arg0: i32) -> (i32, i32) {
    %c0_i32 = arith.constant 0 : i32
    %c0_i32_0 = arith.constant 0 : i32
    %c0_i32_1 = arith.constant 0 : i32
    return %c0_i32, %c0_i32_0 : i32, i32
  }
  func.func @transform_5(%arg0: i32) -> (i32, i32) {
    %c0_i32 = arith.constant 0 : i32
    %c0_i32_0 = arith.constant 0 : i32
    %c0_i32_1 = arith.constant 0 : i32
    return %c0_i32, %c0_i32_0 : i32, i32
  }
  func.func @transform_6(%arg0: i32) -> (i32, i32) {
    %c0_i32 = arith.constant 0 : i32
    %c0_i32_0 = arith.constant 0 : i32
    %c0_i32_1 = arith.constant 0 : i32
    return %c0_i32, %c0_i32_0 : i32, i32
  }
  func.func @transform_7(%arg0: i32) -> (i32, i32) {
    %c0_i32 = arith.constant 0 : i32
    %c0_i32_0 = arith.constant 0 : i32
    return %arg0, %c0_i32 : i32, i32
  }
}

module attributes {stable_mosaic.version = 11 : i64} {
  func.func @_snp_encoder_kernel(%arg0: i32, %arg1: memref<256x32xf32, #tpu.memory_space<vmem>>, %arg2: memref<32x64xbf16, #tpu.memory_space<vmem>>, %arg3: memref<1x64xf32, #tpu.memory_space<vmem>>, %arg4: memref<64x64xbf16, #tpu.memory_space<vmem>>, %arg5: memref<1x64xf32, #tpu.memory_space<vmem>>, %arg6: memref<64x16xbf16, #tpu.memory_space<vmem>>, %arg7: memref<1x16xf32, #tpu.memory_space<vmem>>, %arg8: memref<32x128xf32, #tpu.memory_space<vmem>>) attributes {dimension_semantics = [#tpu.dimension_semantics<parallel>], iteration_bounds = array<i64: 1>, scalar_prefetch = 0 : i64, scratch_operands = 0 : i64, tpu.core_type = #tpu.core_type<tc>, window_params = [{transform_indices = @transform_0, window_bounds = array<i64: 256, 32>}, {pipeline_mode = #tpu.pipeline_mode<synchronous>, transform_indices = @transform_1, window_bounds = array<i64: 32, 64>}, {pipeline_mode = #tpu.pipeline_mode<synchronous>, transform_indices = @transform_2, window_bounds = array<i64: 1, 64>}, {pipeline_mode = #tpu.pipeline_mode<synchronous>, transform_indices = @transform_3, window_bounds = array<i64: 64, 64>}, {pipeline_mode = #tpu.pipeline_mode<synchronous>, transform_indices = @transform_4, window_bounds = array<i64: 1, 64>}, {pipeline_mode = #tpu.pipeline_mode<synchronous>, transform_indices = @transform_5, window_bounds = array<i64: 64, 16>}, {pipeline_mode = #tpu.pipeline_mode<synchronous>, transform_indices = @transform_6, window_bounds = array<i64: 1, 16>}, {transform_indices = @transform_7, window_bounds = array<i64: 32, 128>}]} {
    %c0 = arith.constant 0 : index
    %c0_0 = arith.constant 0 : index
    %0 = vector.load %arg1[%c0, %c0_0] : memref<256x32xf32, #tpu.memory_space<vmem>>, vector<256x32xf32>
    %1 = arith.truncf %0 : vector<256x32xf32> to vector<256x32xbf16>
    %c0_1 = arith.constant 0 : index
    %c0_2 = arith.constant 0 : index
    %2 = vector.load %arg2[%c0_1, %c0_2] : memref<32x64xbf16, #tpu.memory_space<vmem>>, vector<32x64xbf16>
    %cst = arith.constant dense<0.000000e+00> : vector<256x64xf32>
    %3 = tpu.matmul %1, %2, %cst {dimension_numbers = #tpu.dot_dimension_numbers<[1], [0], [0], [1], [0, 0, 1, 1], [], []>} : vector<256x32xbf16>, vector<32x64xbf16>, vector<256x64xf32> -> vector<256x64xf32>
    %c0_3 = arith.constant 0 : index
    %c0_4 = arith.constant 0 : index
    %4 = vector.load %arg3[%c0_3, %c0_4] : memref<1x64xf32, #tpu.memory_space<vmem>>, vector<1x64xf32>
    %5 = vector.broadcast %4 : vector<1x64xf32> to vector<256x64xf32>
    %6 = arith.addf %3, %5 : vector<256x64xf32>
    %cst_5 = arith.constant 0.000000e+00 : f32
    %7 = vector.broadcast %cst_5 : f32 to vector<256x64xf32>
    %8 = arith.maximumf %6, %7 : vector<256x64xf32>
    %9 = arith.truncf %8 : vector<256x64xf32> to vector<256x64xbf16>
    %c0_6 = arith.constant 0 : index
    %c0_7 = arith.constant 0 : index
    %10 = vector.load %arg4[%c0_6, %c0_7] : memref<64x64xbf16, #tpu.memory_space<vmem>>, vector<64x64xbf16>
    %cst_8 = arith.constant dense<0.000000e+00> : vector<256x64xf32>
    %11 = tpu.matmul %9, %10, %cst_8 {dimension_numbers = #tpu.dot_dimension_numbers<[1], [0], [0], [1], [0, 0, 1, 1], [], []>} : vector<256x64xbf16>, vector<64x64xbf16>, vector<256x64xf32> -> vector<256x64xf32>
    %c0_9 = arith.constant 0 : index
    %c0_10 = arith.constant 0 : index
    %12 = vector.load %arg5[%c0_9, %c0_10] : memref<1x64xf32, #tpu.memory_space<vmem>>, vector<1x64xf32>
    %13 = vector.broadcast %12 : vector<1x64xf32> to vector<256x64xf32>
    %14 = arith.addf %11, %13 : vector<256x64xf32>
    %cst_11 = arith.constant 0.000000e+00 : f32
    %15 = vector.broadcast %cst_11 : f32 to vector<256x64xf32>
    %16 = arith.maximumf %14, %15 : vector<256x64xf32>
    %17 = arith.truncf %16 : vector<256x64xf32> to vector<256x64xbf16>
    %c0_12 = arith.constant 0 : index
    %c0_13 = arith.constant 0 : index
    %18 = vector.load %arg6[%c0_12, %c0_13] : memref<64x16xbf16, #tpu.memory_space<vmem>>, vector<64x16xbf16>
    %cst_14 = arith.constant dense<0.000000e+00> : vector<256x16xf32>
    %19 = tpu.matmul %17, %18, %cst_14 {dimension_numbers = #tpu.dot_dimension_numbers<[1], [0], [0], [1], [0, 0, 1, 1], [], []>} : vector<256x64xbf16>, vector<64x16xbf16>, vector<256x16xf32> -> vector<256x16xf32>
    %c0_15 = arith.constant 0 : index
    %c0_16 = arith.constant 0 : index
    %20 = vector.load %arg7[%c0_15, %c0_16] : memref<1x16xf32, #tpu.memory_space<vmem>>, vector<1x16xf32>
    %21 = vector.broadcast %20 : vector<1x16xf32> to vector<256x16xf32>
    %22 = arith.addf %19, %21 : vector<256x16xf32>
    %23 = arith.mulf %22, %22 : vector<256x16xf32>
    %cst_17 = arith.constant dense<0.000000e+00> : vector<256xf32>
    %24 = vector.multi_reduction <add>, %23, %cst_17 [1] : vector<256x16xf32> to vector<256xf32>
    %25 = vector.shape_cast %24 : vector<256xf32> to vector<256x1xf32>
    %cst_18 = arith.constant 1.000000e-24 : f32
    %26 = vector.broadcast %cst_18 : f32 to vector<256x1xf32>
    %27 = arith.maximumf %25, %26 : vector<256x1xf32>
    %28 = math.rsqrt %27 : vector<256x1xf32>
    %29 = vector.broadcast %28 : vector<256x1xf32> to vector<256x16xf32>
    %30 = arith.mulf %22, %29 : vector<256x16xf32>
    %31 = vector.shape_cast %30 : vector<256x16xf32> to vector<32x128xf32>
    %c0_19 = arith.constant 0 : index
    %c0_20 = arith.constant 0 : index
    %32 = vector.load %arg8[%c0_19, %c0_20] : memref<32x128xf32, #tpu.memory_space<vmem>>, vector<32x128xf32>
    tpu.vector_store %arg8[%c0_19, %c0_20], %31 {strides = array<i32>} : memref<32x128xf32, #tpu.memory_space<vmem>>, vector<32x128xf32>,
    return
  }
  func.func @transform_0(%arg0: i32) -> (i32, i32) {
    %c0_i32 = arith.constant 0 : i32
    %c0_i32_0 = arith.constant 0 : i32
    return %arg0, %c0_i32 : i32, i32
  }
  func.func @transform_1(%arg0: i32) -> (i32, i32) {
    %c0_i32 = arith.constant 0 : i32
    %c0_i32_0 = arith.constant 0 : i32
    %c0_i32_1 = arith.constant 0 : i32
    return %c0_i32, %c0_i32_0 : i32, i32
  }
  func.func @transform_2(%arg0: i32) -> (i32, i32) {
    %c0_i32 = arith.constant 0 : i32
    %c0_i32_0 = arith.constant 0 : i32
    %c0_i32_1 = arith.constant 0 : i32
    return %c0_i32, %c0_i32_0 : i32, i32
  }
  func.func @transform_3(%arg0: i32) -> (i32, i32) {
    %c0_i32 = arith.constant 0 : i32
    %c0_i32_0 = arith.constant 0 : i32
    %c0_i32_1 = arith.constant 0 : i32
    return %c0_i32, %c0_i32_0 : i32, i32
  }
  func.func @transform_4(%arg0: i32) -> (i32, i32) {
    %c0_i32 = arith.constant 0 : i32
    %c0_i32_0 = arith.constant 0 : i32
    %c0_i32_1 = arith.constant 0 : i32
    return %c0_i32, %c0_i32_0 : i32, i32
  }
  func.func @transform_5(%arg0: i32) -> (i32, i32) {
    %c0_i32 = arith.constant 0 : i32
    %c0_i32_0 = arith.constant 0 : i32
    %c0_i32_1 = arith.constant 0 : i32
    return %c0_i32, %c0_i32_0 : i32, i32
  }
  func.func @transform_6(%arg0: i32) -> (i32, i32) {
    %c0_i32 = arith.constant 0 : i32
    %c0_i32_0 = arith.constant 0 : i32
    %c0_i32_1 = arith.constant 0 : i32
    return %c0_i32, %c0_i32_0 : i32, i32
  }
  func.func @transform_7(%arg0: i32) -> (i32, i32) {
    %c0_i32 = arith.constant 0 : i32
    %c0_i32_0 = arith.constant 0 : i32
    return %arg0, %c0_i32 : i32, i32
  }
}

module attributes {stable_mosaic.version = 11 : i64} {
  func.func @_snp_encoder_kernel(%arg0: i32, %arg1: memref<256x32xf32, #tpu.memory_space<vmem>>, %arg2: memref<32x64xbf16, #tpu.memory_space<vmem>>, %arg3: memref<1x64xf32, #tpu.memory_space<vmem>>, %arg4: memref<64x64xbf16, #tpu.memory_space<vmem>>, %arg5: memref<1x64xf32, #tpu.memory_space<vmem>>, %arg6: memref<64x16xbf16, #tpu.memory_space<vmem>>, %arg7: memref<1x16xf32, #tpu.memory_space<vmem>>, %arg8: memref<256x16xf32, #tpu.memory_space<vmem>>) attributes {dimension_semantics = [#tpu.dimension_semantics<parallel>], iteration_bounds = array<i64: 1>, scalar_prefetch = 0 : i64, scratch_operands = 0 : i64, tpu.core_type = #tpu.core_type<tc>, window_params = [{transform_indices = @transform_0, window_bounds = array<i64: 256, 32>}, {pipeline_mode = #tpu.pipeline_mode<synchronous>, transform_indices = @transform_1, window_bounds = array<i64: 32, 64>}, {pipeline_mode = #tpu.pipeline_mode<synchronous>, transform_indices = @transform_2, window_bounds = array<i64: 1, 64>}, {pipeline_mode = #tpu.pipeline_mode<synchronous>, transform_indices = @transform_3, window_bounds = array<i64: 64, 64>}, {pipeline_mode = #tpu.pipeline_mode<synchronous>, transform_indices = @transform_4, window_bounds = array<i64: 1, 64>}, {pipeline_mode = #tpu.pipeline_mode<synchronous>, transform_indices = @transform_5, window_bounds = array<i64: 64, 16>}, {pipeline_mode = #tpu.pipeline_mode<synchronous>, transform_indices = @transform_6, window_bounds = array<i64: 1, 16>}, {transform_indices = @transform_7, window_bounds = array<i64: 256, 16>}]} {
    %c0 = arith.constant 0 : index
    %c0_0 = arith.constant 0 : index
    %0 = vector.load %arg1[%c0, %c0_0] : memref<256x32xf32, #tpu.memory_space<vmem>>, vector<256x32xf32>
    %1 = arith.truncf %0 : vector<256x32xf32> to vector<256x32xbf16>
    %c0_1 = arith.constant 0 : index
    %c0_2 = arith.constant 0 : index
    %2 = vector.load %arg2[%c0_1, %c0_2] : memref<32x64xbf16, #tpu.memory_space<vmem>>, vector<32x64xbf16>
    %cst = arith.constant dense<0.000000e+00> : vector<256x64xf32>
    %3 = tpu.matmul %1, %2, %cst {dimension_numbers = #tpu.dot_dimension_numbers<[1], [0], [0], [1], [0, 0, 1, 1], [], []>} : vector<256x32xbf16>, vector<32x64xbf16>, vector<256x64xf32> -> vector<256x64xf32>
    %c0_3 = arith.constant 0 : index
    %c0_4 = arith.constant 0 : index
    %4 = vector.load %arg3[%c0_3, %c0_4] : memref<1x64xf32, #tpu.memory_space<vmem>>, vector<1x64xf32>
    %5 = vector.broadcast %4 : vector<1x64xf32> to vector<256x64xf32>
    %6 = arith.addf %3, %5 : vector<256x64xf32>
    %cst_5 = arith.constant 0.000000e+00 : f32
    %7 = vector.broadcast %cst_5 : f32 to vector<256x64xf32>
    %8 = arith.maximumf %6, %7 : vector<256x64xf32>
    %9 = arith.truncf %8 : vector<256x64xf32> to vector<256x64xbf16>
    %c0_6 = arith.constant 0 : index
    %c0_7 = arith.constant 0 : index
    %10 = vector.load %arg4[%c0_6, %c0_7] : memref<64x64xbf16, #tpu.memory_space<vmem>>, vector<64x64xbf16>
    %cst_8 = arith.constant dense<0.000000e+00> : vector<256x64xf32>
    %11 = tpu.matmul %9, %10, %cst_8 {dimension_numbers = #tpu.dot_dimension_numbers<[1], [0], [0], [1], [0, 0, 1, 1], [], []>} : vector<256x64xbf16>, vector<64x64xbf16>, vector<256x64xf32> -> vector<256x64xf32>
    %c0_9 = arith.constant 0 : index
    %c0_10 = arith.constant 0 : index
    %12 = vector.load %arg5[%c0_9, %c0_10] : memref<1x64xf32, #tpu.memory_space<vmem>>, vector<1x64xf32>
    %13 = vector.broadcast %12 : vector<1x64xf32> to vector<256x64xf32>
    %14 = arith.addf %11, %13 : vector<256x64xf32>
    %cst_11 = arith.constant 0.000000e+00 : f32
    %15 = vector.broadcast %cst_11 : f32 to vector<256x64xf32>
    %16 = arith.maximumf %14, %15 : vector<256x64xf32>
    %17 = arith.truncf %16 : vector<256x64xf32> to vector<256x64xbf16>
    %c0_12 = arith.constant 0 : index
    %c0_13 = arith.constant 0 : index
    %18 = vector.load %arg6[%c0_12, %c0_13] : memref<64x16xbf16, #tpu.memory_space<vmem>>, vector<64x16xbf16>
    %cst_14 = arith.constant dense<0.000000e+00> : vector<256x16xf32>
    %19 = tpu.matmul %17, %18, %cst_14 {dimension_numbers = #tpu.dot_dimension_numbers<[1], [0], [0], [1], [0, 0, 1, 1], [], []>} : vector<256x64xbf16>, vector<64x16xbf16>, vector<256x16xf32> -> vector<256x16xf32>
    %c0_15 = arith.constant 0 : index
    %c0_16 = arith.constant 0 : index
    %20 = vector.load %arg7[%c0_15, %c0_16] : memref<1x16xf32, #tpu.memory_space<vmem>>, vector<1x16xf32>
    %21 = vector.broadcast %20 : vector<1x16xf32> to vector<256x16xf32>
    %22 = arith.addf %19, %21 : vector<256x16xf32>
    %23 = arith.mulf %22, %22 : vector<256x16xf32>
    %cst_17 = arith.constant dense<0.000000e+00> : vector<256xf32>
    %24 = vector.multi_reduction <add>, %23, %cst_17 [1] : vector<256x16xf32> to vector<256xf32>
    %25 = vector.shape_cast %24 : vector<256xf32> to vector<256x1xf32>
    %cst_18 = arith.constant 1.000000e-24 : f32
    %26 = vector.broadcast %cst_18 : f32 to vector<256x1xf32>
    %27 = arith.maximumf %25, %26 : vector<256x1xf32>
    %28 = math.rsqrt %27 : vector<256x1xf32>
    %29 = vector.broadcast %28 : vector<256x1xf32> to vector<256x16xf32>
    %30 = arith.mulf %22, %29 : vector<256x16xf32>
    %c0_19 = arith.constant 0 : index
    %c0_20 = arith.constant 0 : index
    %31 = vector.load %arg8[%c0_19, %c0_20] : memref<256x16xf32, #tpu.memory_space<vmem>>, vector<256x16xf32>
    tpu.vector_store %arg8[%c0_19, %c0_20], %30 {strides = array<i32>} : memref<256x16xf32, #tpu.memory_space<vmem>>, vector<256x16xf32>,
    return
  }
  func.func @transform_0(%arg0: i32) -> (i32, i32) {
    %c0_i32 = arith.constant 0 : i32
    %c0_i32_0 = arith.constant 0 : i32
    return %arg0, %c0_i32 : i32, i32
  }
  func.func @transform_1(%arg0: i32) -> (i32, i32) {
    %c0_i32 = arith.constant 0 : i32
    %c0_i32_0 = arith.constant 0 : i32
    %c0_i32_1 = arith.constant 0 : i32
    return %c0_i32, %c0_i32_0 : i32, i32
  }
  func.func @transform_2(%arg0: i32) -> (i32, i32) {
    %c0_i32 = arith.constant 0 : i32
    %c0_i32_0 = arith.constant 0 : i32
    %c0_i32_1 = arith.constant 0 : i32
    return %c0_i32, %c0_i32_0 : i32, i32
  }
  func.func @transform_3(%arg0: i32) -> (i32, i32) {
    %c0_i32 = arith.constant 0 : i32
    %c0_i32_0 = arith.constant 0 : i32
    %c0_i32_1 = arith.constant 0 : i32
    return %c0_i32, %c0_i32_0 : i32, i32
  }
  func.func @transform_4(%arg0: i32) -> (i32, i32) {
    %c0_i32 = arith.constant 0 : i32
    %c0_i32_0 = arith.constant 0 : i32
    %c0_i32_1 = arith.constant 0 : i32
    return %c0_i32, %c0_i32_0 : i32, i32
  }
  func.func @transform_5(%arg0: i32) -> (i32, i32) {
    %c0_i32 = arith.constant 0 : i32
    %c0_i32_0 = arith.constant 0 : i32
    %c0_i32_1 = arith.constant 0 : i32
    return %c0_i32, %c0_i32_0 : i32, i32
  }
  func.func @transform_6(%arg0: i32) -> (i32, i32) {
    %c0_i32 = arith.constant 0 : i32
    %c0_i32_0 = arith.constant 0 : i32
    %c0_i32_1 = arith.constant 0 : i32
    return %c0_i32, %c0_i32_0 : i32, i32
  }
  func.func @transform_7(%arg0: i32) -> (i32, i32) {
    %c0_i32 = arith.constant 0 : i32
    %c0_i32_0 = arith.constant 0 : i32
    return %arg0, %c0_i32 : i32, i32
  }
}

module attributes {stable_mosaic.version = 11 : i64} {
  func.func @_snp_encoder_kernel(%arg0: i32, %arg1: memref<256x32xf32, #tpu.memory_space<vmem>>, %arg2: memref<32x64xbf16, #tpu.memory_space<vmem>>, %arg3: memref<1x64xf32, #tpu.memory_space<vmem>>, %arg4: memref<64x64xbf16, #tpu.memory_space<vmem>>, %arg5: memref<1x64xf32, #tpu.memory_space<vmem>>, %arg6: memref<64x16xbf16, #tpu.memory_space<vmem>>, %arg7: memref<1x16xf32, #tpu.memory_space<vmem>>, %arg8: memref<256x16xf32, #tpu.memory_space<vmem>>) attributes {dimension_semantics = [#tpu.dimension_semantics<parallel>], iteration_bounds = array<i64: 1>, scalar_prefetch = 0 : i64, scratch_operands = 0 : i64, tpu.core_type = #tpu.core_type<tc>, window_params = [{transform_indices = @transform_0, window_bounds = array<i64: 256, 32>}, {pipeline_mode = #tpu.pipeline_mode<synchronous>, transform_indices = @transform_1, window_bounds = array<i64: 32, 64>}, {pipeline_mode = #tpu.pipeline_mode<synchronous>, transform_indices = @transform_2, window_bounds = array<i64: 1, 64>}, {pipeline_mode = #tpu.pipeline_mode<synchronous>, transform_indices = @transform_3, window_bounds = array<i64: 64, 64>}, {pipeline_mode = #tpu.pipeline_mode<synchronous>, transform_indices = @transform_4, window_bounds = array<i64: 1, 64>}, {pipeline_mode = #tpu.pipeline_mode<synchronous>, transform_indices = @transform_5, window_bounds = array<i64: 64, 16>}, {pipeline_mode = #tpu.pipeline_mode<synchronous>, transform_indices = @transform_6, window_bounds = array<i64: 1, 16>}, {transform_indices = @transform_7, window_bounds = array<i64: 256, 16>}]} {
    %c0 = arith.constant 0 : index
    %c0_0 = arith.constant 0 : index
    %0 = vector.load %arg1[%c0, %c0_0] : memref<256x32xf32, #tpu.memory_space<vmem>>, vector<256x32xf32>
    %1 = arith.truncf %0 : vector<256x32xf32> to vector<256x32xbf16>
    %c0_1 = arith.constant 0 : index
    %c0_2 = arith.constant 0 : index
    %2 = vector.load %arg2[%c0_1, %c0_2] : memref<32x64xbf16, #tpu.memory_space<vmem>>, vector<32x64xbf16>
    %cst = arith.constant dense<0.000000e+00> : vector<256x64xf32>
    %3 = tpu.matmul %1, %2, %cst {dimension_numbers = #tpu.dot_dimension_numbers<[1], [0], [0], [1], [0, 0, 1, 1], [], []>} : vector<256x32xbf16>, vector<32x64xbf16>, vector<256x64xf32> -> vector<256x64xf32>
    %c0_3 = arith.constant 0 : index
    %c0_4 = arith.constant 0 : index
    %4 = vector.load %arg3[%c0_3, %c0_4] : memref<1x64xf32, #tpu.memory_space<vmem>>, vector<1x64xf32>
    %5 = vector.broadcast %4 : vector<1x64xf32> to vector<256x64xf32>
    %6 = arith.addf %3, %5 : vector<256x64xf32>
    %cst_5 = arith.constant 0.000000e+00 : f32
    %7 = vector.broadcast %cst_5 : f32 to vector<256x64xf32>
    %8 = arith.maximumf %6, %7 : vector<256x64xf32>
    %9 = arith.truncf %8 : vector<256x64xf32> to vector<256x64xbf16>
    %c0_6 = arith.constant 0 : index
    %c0_7 = arith.constant 0 : index
    %10 = vector.load %arg4[%c0_6, %c0_7] : memref<64x64xbf16, #tpu.memory_space<vmem>>, vector<64x64xbf16>
    %cst_8 = arith.constant dense<0.000000e+00> : vector<256x64xf32>
    %11 = tpu.matmul %9, %10, %cst_8 {dimension_numbers = #tpu.dot_dimension_numbers<[1], [0], [0], [1], [0, 0, 1, 1], [], []>} : vector<256x64xbf16>, vector<64x64xbf16>, vector<256x64xf32> -> vector<256x64xf32>
    %c0_9 = arith.constant 0 : index
    %c0_10 = arith.constant 0 : index
    %12 = vector.load %arg5[%c0_9, %c0_10] : memref<1x64xf32, #tpu.memory_space<vmem>>, vector<1x64xf32>
    %13 = vector.broadcast %12 : vector<1x64xf32> to vector<256x64xf32>
    %14 = arith.addf %11, %13 : vector<256x64xf32>
    %cst_11 = arith.constant 0.000000e+00 : f32
    %15 = vector.broadcast %cst_11 : f32 to vector<256x64xf32>
    %16 = arith.maximumf %14, %15 : vector<256x64xf32>
    %17 = arith.truncf %16 : vector<256x64xf32> to vector<256x64xbf16>
    %c0_12 = arith.constant 0 : index
    %c0_13 = arith.constant 0 : index
    %18 = vector.load %arg6[%c0_12, %c0_13] : memref<64x16xbf16, #tpu.memory_space<vmem>>, vector<64x16xbf16>
    %cst_14 = arith.constant dense<0.000000e+00> : vector<256x16xf32>
    %19 = tpu.matmul %17, %18, %cst_14 {dimension_numbers = #tpu.dot_dimension_numbers<[1], [0], [0], [1], [0, 0, 1, 1], [], []>} : vector<256x64xbf16>, vector<64x16xbf16>, vector<256x16xf32> -> vector<256x16xf32>
    %c0_15 = arith.constant 0 : index
    %c0_16 = arith.constant 0 : index
    %20 = vector.load %arg7[%c0_15, %c0_16] : memref<1x16xf32, #tpu.memory_space<vmem>>, vector<1x16xf32>
    %21 = vector.broadcast %20 : vector<1x16xf32> to vector<256x16xf32>
    %22 = arith.addf %19, %21 : vector<256x16xf32>
    %23 = arith.mulf %22, %22 : vector<256x16xf32>
    %cst_17 = arith.constant dense<0.000000e+00> : vector<256xf32>
    %24 = vector.multi_reduction <add>, %23, %cst_17 [1] : vector<256x16xf32> to vector<256xf32>
    %25 = vector.shape_cast %24 : vector<256xf32> to vector<256x1xf32>
    %cst_18 = arith.constant 1.000000e-24 : f32
    %26 = vector.broadcast %cst_18 : f32 to vector<256x1xf32>
    %27 = arith.maximumf %25, %26 : vector<256x1xf32>
    %28 = math.rsqrt %27 : vector<256x1xf32>
    %29 = vector.broadcast %28 : vector<256x1xf32> to vector<256x16xf32>
    %30 = arith.mulf %22, %29 : vector<256x16xf32>
    %c0_19 = arith.constant 0 : index
    %c0_20 = arith.constant 0 : index
    %31 = vector.load %arg8[%c0_19, %c0_20] : memref<256x16xf32, #tpu.memory_space<vmem>>, vector<256x16xf32>
    tpu.vector_store %arg8[%c0_19, %c0_20], %30 {strides = array<i32>} : memref<256x16xf32, #tpu.memory_space<vmem>>, vector<256x16xf32>,
    return
  }
  func.func @transform_0(%arg0: i32) -> (i32, i32) {
    %c0_i32 = arith.constant 0 : i32
    %c0_i32_0 = arith.constant 0 : i32
    return %arg0, %c0_i32 : i32, i32
  }
  func.func @transform_1(%arg0: i32) -> (i32, i32) {
    %c0_i32 = arith.constant 0 : i32
    %c0_i32_0 = arith.constant 0 : i32
    %c0_i32_1 = arith.constant 0 : i32
    return %c0_i32, %c0_i32_0 : i32, i32
  }
  func.func @transform_2(%arg0: i32) -> (i32, i32) {
    %c0_i32 = arith.constant 0 : i32
    %c0_i32_0 = arith.constant 0 : i32
    %c0_i32_1 = arith.constant 0 : i32
    return %c0_i32, %c0_i32_0 : i32, i32
  }
  func.func @transform_3(%arg0: i32) -> (i32, i32) {
    %c0_i32 = arith.constant 0 : i32
    %c0_i32_0 = arith.constant 0 : i32
    %c0_i32_1 = arith.constant 0 : i32
    return %c0_i32, %c0_i32_0 : i32, i32
  }
  func.func @transform_4(%arg0: i32) -> (i32, i32) {
    %c0_i32 = arith.constant 0 : i32
    %c0_i32_0 = arith.constant 0 : i32
    %c0_i32_1 = arith.constant 0 : i32
    return %c0_i32, %c0_i32_0 : i32, i32
  }
  func.func @transform_5(%arg0: i32) -> (i32, i32) {
    %c0_i32 = arith.constant 0 : i32
    %c0_i32_0 = arith.constant 0 : i32
    %c0_i32_1 = arith.constant 0 : i32
    return %c0_i32, %c0_i32_0 : i32, i32
  }
  func.func @transform_6(%arg0: i32) -> (i32, i32) {
    %c0_i32 = arith.constant 0 : i32
    %c0_i32_0 = arith.constant 0 : i32
    %c0_i32_1 = arith.constant 0 : i32
    return %c0_i32, %c0_i32_0 : i32, i32
  }
  func.func @transform_7(%arg0: i32) -> (i32, i32) {
    %c0_i32 = arith.constant 0 : i32
    %c0_i32_0 = arith.constant 0 : i32
    return %arg0, %c0_i32 : i32, i32
  }
}

</mosaic_0001>

<bundles_post_ra>
// kernel: tpu_custom_call.1
= control target key start
LH: loop header
LB: loop body
LE: loop exit
PB: predicated region body
PF: predicated region fallthrough
CT: control target
= control target key end

     0   :  { %vm98_vm0 = vcmask 261120   ;;  %vm395_vm1 = vcmask 523264   ;;  %vm933_vm2 = vcmask 130048   ;;  %s2129_s1 = inlined_call_operand.vmem [shape: bf16[32,64], index: 1, kind: input, shape index: {}]   ;;  %s2130_s0 = inlined_call_operand.vmem [shape: f32[256,32], index: 0, kind: input, shape index: {}]   ;;  %s2131_s3 = inlined_call_operand.vmem [shape: bf16[64,64], index: 3, kind: input, shape index: {}]   ;;  %s2132_s5 = inlined_call_operand.vmem [shape: bf16[64,16], index: 5, kind: input, shape index: {}]   ;;  %s2133_s2 = inlined_call_operand.vmem [shape: f32[1,64], index: 2, kind: input, shape index: {}]   ;;  %s2134_s4 = inlined_call_operand.vmem [shape: f32[1,64], index: 4, kind: input, shape index: {}]   ;;  %s2135_s6 = inlined_call_operand.vmem [shape: f32[1,16], index: 6, kind: input, shape index: {}]   ;;  %s2136_s7 = inlined_call_operand.vmem [shape: f32[256,16], index: 7, kind: output, shape index: {}]  }
   0x1   :  { %v1401_v0 = vld [vmem:[%s2129_s1] sm:$0xff]   ;;  %v1402_v1 = vld [vmem:[%s2129_s1 + $0x8] sm:$0xff]   ;;  %v29_v5 = vld [vmem:[%s2130_s0 + $0x10] sm:$0xff] }
   0x2   :  { %1281 = vmatprep.subr.bf16.mxu0 %v1401_v0  ;;  %v27_v2 = vld [vmem:[%s2130_s0] sm:$0xff]  ;;  %v28_v3 = vld [vmem:[%s2130_s0 + $0x8] sm:$0xff]  ;;  %1397 = vmatprep.subr.bf16.mxu1 %v1401_v0  ;;  %v30_v6 = vld [vmem:[%s2130_s0 + $0x18] sm:$0xff] }
   0x3   :  { %1282 = vmatpush3.bf16.msra.mxu0 %v1401_v0  ;;  %v59_v4 = vpack.c.bf16 %v28_v3, %v27_v2  ;;  %1399 = vmatpush3.bf16.msra.mxu1 %v1401_v0  ;;  %v31_v7 = vld [vmem:[%s2130_s0 + $0x20] sm:$0xff]  ;;  %v32_v8 = vld [vmem:[%s2130_s0 + $0x28] sm:$0xff]  ;;  %v60_v9 = vpack.c.bf16 %v30_v6, %v29_v5  ;;  %v45_v14 = vld [vmem:[%s2130_s0 + $0x90] sm:$0xff] }
   0x4   :  { %1283 = vmatprep.subr.bf16.mxu0 %v1402_v1  ;;  %1398 = vmatprep.subr.bf16.mxu1 %v1402_v1  ;;  %v61_v10 = vpack.c.bf16 %v32_v8, %v31_v7  ;;  %v43_v11 = vld [vmem:[%s2130_s0 + $0x80] sm:$0xff]  ;;  %v44_v12 = vld [vmem:[%s2130_s0 + $0x88] sm:$0xff]  ;;  %v46_v15 = vld [vmem:[%s2130_s0 + $0x98] sm:$0xff] }
   0x5   :  { %1285 = vmatprep.mubr.msk.bf16.mxu0 %vm98_vm0, %v59_v4  ;;  %v67_v13 = vpack.c.bf16 %v44_v12, %v43_v11  ;;  %v47_v16 = vld [vmem:[%s2130_s0 + $0xa0] sm:$0xff]  ;;  %v68_v17 = vpack.c.bf16 %v46_v15, %v45_v14  ;;  %v48_v18 = vld [vmem:[%s2130_s0 + $0xa8] sm:$0xff]  ;;  %v33_v19 = vld [vmem:[%s2130_s0 + $0x30] sm:$0xff] }
   0x6   :  { %v34_v20 = vld [vmem:[%s2130_s0 + $0x38] sm:$0xff]  ;;  %v35_v21 = vld [vmem:[%s2130_s0 + $0x40] sm:$0xff]  ;;  %v69_v22 = vpack.c.bf16 %v48_v18, %v47_v16  ;;  %v36_v23 = vld [vmem:[%s2130_s0 + $0x48] sm:$0xff] }
   0x7   :  { %1284 = vmatpush3.bf16.msra.mxu0 %v1402_v1  ;;  %1400 = vmatpush3.bf16.msra.mxu1 %v1402_v1  ;;  %v49_v24 = vld [vmem:[%s2130_s0 + $0xb0] sm:$0xff]  ;;  %v50_v25 = vld [vmem:[%s2130_s0 + $0xb8] sm:$0xff]  ;;  %v51_v26 = vld [vmem:[%s2130_s0 + $0xc0] sm:$0xff]  ;;  %v62_v29 = vpack.c.bf16 %v34_v20, %v33_v19  ;;  %v63_v31 = vpack.c.bf16 %v36_v23, %v35_v21 }
   0x8   :  { %1301 = vmatprep.mubr.msk.bf16.mxu1 %vm98_vm0, %v67_v13  ;;  %v52_v27 = vld [vmem:[%s2130_s0 + $0xc8] sm:$0xff]  ;;  %v1403_v28 = vld [vmem:[%s2131_s3] sm:$0xff]   ;;  %v70_v32 = vpack.c.bf16 %v50_v25, %v49_v24  ;;  %v1405_v34 = vld [vmem:[%s2131_s3 + $0x10] sm:$0xff]  }
   0x9   :  { %v1404_v30 = vld [vmem:[%s2131_s3 + $0x8] sm:$0xff]   ;;  %1317 = vmatprep.subr.bf16.mxu1 %v1403_v28  ;;  %v71_v33 = vpack.c.bf16 %v52_v27, %v51_v26  ;;  %v37_v35 = vld [vmem:[%s2130_s0 + $0x50] sm:$0xff]  ;;  %v38_v36 = vld [vmem:[%s2130_s0 + $0x58] sm:$0xff] }
   0xa   :  { %1286 = vmatmul.mubr.msk.bf16.vlgmr.msra.gmra.mrb[0].mxu0 %vm98_vm0, %v60_v9  ;;  %1302 = vmatmul.mubr.msk.bf16.vlgmr.msra.gmra.mrb[0].mxu1 %vm98_vm0, %v68_v17  ;;  %v39_v37 = vld [vmem:[%s2130_s0 + $0x60] sm:$0xff]  ;;  %v40_v38 = vld [vmem:[%s2130_s0 + $0x68] sm:$0xff]  ;;  %v53_v39 = vld [vmem:[%s2130_s0 + $0xd0] sm:$0xff]  ;;  %v64_v43 = vpack.c.bf16 %v38_v36, %v37_v35 }
   0xb   :  { %1289 = vmatprep.mubr.msk.bf16.mxu0 %vm98_vm0, %v61_v10  ;;  %1305 = vmatprep.mubr.msk.bf16.mxu1 %vm98_vm0, %v69_v22  ;;  %v54_v40 = vld [vmem:[%s2130_s0 + $0xd8] sm:$0xff]  ;;  %v55_v41 = vld [vmem:[%s2130_s0 + $0xe0] sm:$0xff]  ;;  %v56_v42 = vld [vmem:[%s2130_s0 + $0xe8] sm:$0xff]  ;;  %v65_v44 = vpack.c.bf16 %v40_v38, %v39_v37 }
   0xc   :  { %1318 = vmatpush3.bf16.msra.mxu1 %v1403_v28  ;;  %v72_v45 = vpack.c.bf16 %v54_v40, %v53_v39  ;;  %v73_v46 = vpack.c.bf16 %v56_v42, %v55_v41  ;;  %v41_v47 = vld [vmem:[%s2130_s0 + $0x70] sm:$0xff]  ;;  %v42_v48 = vld [vmem:[%s2130_s0 + $0x78] sm:$0xff]  ;;  %v1407_v54 = vld [vmem:[%s2132_s5] sm:$0xff]  }
   0xd   :  { %1319 = vmatprep.subr.bf16.mxu1 %v1404_v30  ;;  %v57_v49 = vld [vmem:[%s2130_s0 + $0xf0] sm:$0xff]  ;;  %v58_v50 = vld [vmem:[%s2130_s0 + $0xf8] sm:$0xff]  ;;  %v66_v51 = vpack.c.bf16 %v42_v48, %v41_v47  ;;  %v1408_v55 = vld [vmem:[%s2132_s5 + $0x8] sm:$0xff]   ;;  %1357 = vmatprep.subr.bf16.mxu0 %v1407_v54 }
   0xe   :  { %v74_v52 = vpack.c.bf16 %v58_v50, %v57_v49  ;;  %v1406_v53 = vld [vmem:[%s2131_s3 + $0x18] sm:$0xff]   ;;  %1358 = vmatpush3.bf16.msra.mxu0 %v1407_v54  ;;  %v1409_v56 = vld [vmem:[%s2132_s5 + $0x10] sm:$0xff]   ;;  %v1657_v57 = vld [vmem:[%s2133_s2] ss:$0 sm:$0xff] }
   0xf   :  { %1359 = vmatprep.subr.bf16.mxu0 %v1408_v55 }
  0x10   :  { %1320 = vmatpush3.bf16.msra.mxu1 %v1404_v30 }
  0x11   :  { %1321 = vmatprep.subr.bf16.mxu1 %v1405_v34 }
  0x12   :  { %1290 = vmatmul.mubr.msk.bf16.gmra.mrb[4].mxu0 %vm98_vm0, %v62_v29  ;;  %1306 = vmatmul.mubr.msk.bf16.gmra.mrb[4].mxu1 %vm98_vm0, %v70_v32 }
  0x13   :  { %1293 = vmatprep.mubr.msk.bf16.mxu0 %vm98_vm0, %v63_v31  ;;  %1309 = vmatprep.mubr.msk.bf16.mxu1 %vm98_vm0, %v71_v33 }
  0x14   :  { %1322 = vmatpush3.bf16.msra.mxu1 %v1405_v34  ;;  %1360 = vmatpush3.bf16.msra.mxu0 %v1408_v55 }
  0x15   :  { %1323 = vmatprep.subr.bf16.mxu1 %v1406_v53  ;;  %1361 = vmatprep.subr.bf16.mxu0 %v1409_v56 }
  0x18   :  { %1324 = vmatpush3.bf16.msra.mxu1 %v1406_v53  ;;  %1362 = vmatpush3.bf16.msra.mxu0 %v1409_v56 }
  0x1a   :  { %1294 = vmatmul.mubr.msk.bf16.gmra.mrb[8].mxu0 %vm98_vm0, %v64_v43  ;;  %1310 = vmatmul.mubr.msk.bf16.gmra.mrb[8].mxu1 %vm98_vm0, %v72_v45 }
  0x1b   :  { %1297 = vmatprep.mubr.msk.bf16.mxu0 %vm98_vm0, %v65_v44  ;;  %1313 = vmatprep.mubr.msk.bf16.mxu1 %vm98_vm0, %v73_v46 }
  0x22   :  { %1298 = vmatmul.mubr.msk.bf16.gmra.mrb[12].mxu0 %vm98_vm0, %v66_v51  ;;  %1314 = vmatmul.mubr.msk.bf16.gmra.mrb[12].mxu1 %vm98_vm0, %v74_v52 }
  0xdd   :  { %v1287_v58 = vpop.f32.mrb[0].mxu0  ;;  %v1303_v61 = vpop.f32.mrb[0].mxu1 }
  0xde   :  { %v190_v59 = vadd.f32 %v1287_v58, %v1657_v57  ;;  %v181_v60 = vpop.f32.mrb[1].mxu0  ;;  %v254_v0 = vadd.f32 %v1303_v61, %v1657_v57  ;;  %v245_v1 = vpop.f32.mrb[1].mxu1 }
  0xdf   :  { %v182_v62 = vadd.f32 %v1657_v57, %v181_v60  ;;  %v1288_v63 = vpop.f32.mrb[2].mxu0  ;;  %v246_v4 = vadd.f32 %v1657_v57, %v245_v1  ;;  %v1304_v5 = vpop.f32.mrb[2].mxu1 }
  0xe0   :  { %v193_v2 = vadd.f32 %v1288_v63, %v1657_v57  ;;  %v184_v3 = vpop.f32.mrb[3].mxu0  ;;  %v326_v7 = vmax.f32 %v254_v0, 0.0  ;;  %v257_v8 = vadd.f32 %v1304_v5, %v1657_v57  ;;  %v248_v9 = vpop.f32.mrb[3].mxu1  ;;  %v310_v10 = vmax.f32 %v190_v59, 0.0 }
  0xe1   :  { %v185_v6 = vadd.f32 %v1657_v57, %v184_v3  ;;  %v324_v12 = vmax.f32 %v246_v4, 0.0  ;;  %v249_v13 = vadd.f32 %v1657_v57, %v248_v9  ;;  %v308_v14 = vmax.f32 %v182_v62, 0.0 }
  0xe2   :  { %v311_v11 = vmax.f32 %v193_v2, 0.0  ;;  %v327_v16 = vmax.f32 %v257_v8, 0.0 }
  0xe3   :  { %v309_v15 = vmax.f32 %v185_v6, 0.0  ;;  %v325_v18 = vmax.f32 %v249_v13, 0.0 }
  0xe4   :  { %v341_v17 = vpack.c.bf16 %v311_v11, %v310_v10  ;;  %v1667_v21 = vpack.c.bf16 %v327_v16, %v326_v7 }
  0xe5   :  { %v340_v19 = vpack.c.bf16 %v309_v15, %v308_v14  ;;  %v1291_v20 = vpop.f32.mrb[4].mxu0  ;;  %v1670_v24 = vpack.c.bf16 %v325_v18, %v324_v12  ;;  %v1307_v25 = vpop.f32.mrb[4].mxu1 }
  0xe6   :  { %v206_v22 = vadd.f32 %v1291_v20, %v1657_v57  ;;  %v197_v23 = vpop.f32.mrb[5].mxu0  ;;  %v270_v28 = vadd.f32 %v1307_v25, %v1657_v57  ;;  %v261_v29 = vpop.f32.mrb[5].mxu1 }
  0xe7   :  { %v198_v26 = vadd.f32 %v1657_v57, %v197_v23  ;;  %v1292_v27 = vpop.f32.mrb[6].mxu0  ;;  %1325 = vmatprep.mubr.msk.bf16.mxu1 %vm395_vm1, %v340_v19  ;;  %v262_v32 = vadd.f32 %v1657_v57, %v261_v29  ;;  %v1308_v33 = vpop.f32.mrb[6].mxu1 }
  0xe8   :  { %v209_v30 = vadd.f32 %v1292_v27, %v1657_v57  ;;  %v200_v31 = vpop.f32.mrb[7].mxu0  ;;  %1326 = vmatmul.mubr.msk.bf16.vlgmr.msra.gmra.mrb[16].mxu1 %vm395_vm1, %v341_v17  ;;  %v330_v35 = vmax.f32 %v270_v28, 0.0  ;;  %v273_v36 = vadd.f32 %v1308_v33, %v1657_v57  ;;  %v264_v37 = vpop.f32.mrb[7].mxu1  ;;  %v314_v38 = vmax.f32 %v206_v22, 0.0 }
  0xe9   :  { %v201_v34 = vadd.f32 %v1657_v57, %v200_v31  ;;  %v328_v40 = vmax.f32 %v262_v32, 0.0  ;;  %v265_v41 = vadd.f32 %v1657_v57, %v264_v37  ;;  %v312_v42 = vmax.f32 %v198_v26, 0.0 }
  0xea   :  { %v315_v39 = vmax.f32 %v209_v30, 0.0  ;;  %v331_v44 = vmax.f32 %v273_v36, 0.0 }
  0xeb   :  { %v313_v43 = vmax.f32 %v201_v34, 0.0  ;;  %v329_v46 = vmax.f32 %v265_v41, 0.0 }
  0xec   :  { %v343_v45 = vpack.c.bf16 %v315_v39, %v314_v38  ;;  %v1681_v49 = vpack.c.bf16 %v331_v44, %v330_v35 }
  0xed   :  { %v342_v47 = vpack.c.bf16 %v313_v43, %v312_v42  ;;  %v1295_v48 = vpop.f32.mrb[8].mxu0  ;;  %v350_v52 = vpack.c.bf16 %v329_v46, %v328_v40  ;;  %v1311_v53 = vpop.f32.mrb[8].mxu1 }
  0xee   :  { %v222_v50 = vadd.f32 %v1295_v48, %v1657_v57  ;;  %v213_v51 = vpop.f32.mrb[9].mxu0  ;;  %v286_v56 = vadd.f32 %v1311_v53, %v1657_v57  ;;  %v277_v58 = vpop.f32.mrb[9].mxu1 }
  0xef   :  { %v214_v54 = vadd.f32 %v1657_v57, %v213_v51  ;;  %v1296_v55 = vpop.f32.mrb[10].mxu0  ;;  %1329 = vmatprep.mubr.msk.bf16.mxu1 %vm395_vm1, %v342_v47  ;;  %v278_v61 = vadd.f32 %v1657_v57, %v277_v58  ;;  %v1312_v62 = vpop.f32.mrb[10].mxu1 }
  0xf0   :  { %v225_v59 = vadd.f32 %v1296_v55, %v1657_v57  ;;  %v216_v60 = vpop.f32.mrb[11].mxu0  ;;  %1330 = vmatmul.mubr.msk.bf16.gmra.mrb[20].mxu1 %vm395_vm1, %v343_v45  ;;  %v334_v0 = vmax.f32 %v286_v56, 0.0  ;;  %v289_v1 = vadd.f32 %v1312_v62, %v1657_v57  ;;  %v280_v2 = vpop.f32.mrb[11].mxu1  ;;  %v318_v3 = vmax.f32 %v222_v50, 0.0 }
  0xf1   :  { %v217_v63 = vadd.f32 %v1657_v57, %v216_v60  ;;  %v332_v5 = vmax.f32 %v278_v61, 0.0  ;;  %v281_v6 = vadd.f32 %v1657_v57, %v280_v2  ;;  %v316_v7 = vmax.f32 %v214_v54, 0.0 }
  0xf2   :  { %v319_v4 = vmax.f32 %v225_v59, 0.0  ;;  %v335_v9 = vmax.f32 %v289_v1, 0.0 }
  0xf3   :  { %v317_v8 = vmax.f32 %v217_v63, 0.0  ;;  %v333_v11 = vmax.f32 %v281_v6, 0.0 }
  0xf4   :  { %v345_v10 = vpack.c.bf16 %v319_v4, %v318_v3  ;;  %v353_v14 = vpack.c.bf16 %v335_v9, %v334_v0 }
  0xf5   :  { %v344_v12 = vpack.c.bf16 %v317_v8, %v316_v7  ;;  %v1299_v13 = vpop.f32.mrb[12].mxu0  ;;  %v352_v17 = vpack.c.bf16 %v333_v11, %v332_v5  ;;  %v1315_v18 = vpop.f32.mrb[12].mxu1 }
  0xf6   :  { %v238_v15 = vadd.f32 %v1299_v13, %v1657_v57  ;;  %v229_v16 = vpop.f32.mrb[13].mxu0  ;;  %v302_v22 = vadd.f32 %v1315_v18, %v1657_v57  ;;  %v293_v23 = vpop.f32.mrb[13].mxu1 }
  0xf7   :  { %v230_v19 = vadd.f32 %v1657_v57, %v229_v16  ;;  %v1300_v20 = vpop.f32.mrb[14].mxu0  ;;  %1333 = vmatprep.mubr.msk.bf16.mxu1 %vm395_vm1, %v344_v12  ;;  %v294_v27 = vadd.f32 %v1657_v57, %v293_v23  ;;  %v1316_v28 = vpop.f32.mrb[14].mxu1 }
  0xf8   :  { %v241_v25 = vadd.f32 %v1300_v20, %v1657_v57  ;;  %v232_v26 = vpop.f32.mrb[15].mxu0  ;;  %1334 = vmatmul.mubr.msk.bf16.gmra.mrb[24].mxu1 %vm395_vm1, %v345_v10  ;;  %v338_v30 = vmax.f32 %v302_v22, 0.0  ;;  %v305_v31 = vadd.f32 %v1316_v28, %v1657_v57  ;;  %v296_v32 = vpop.f32.mrb[15].mxu1  ;;  %v322_v33 = vmax.f32 %v238_v15, 0.0 }
  0xf9   :  { %v233_v29 = vadd.f32 %v1657_v57, %v232_v26  ;;  %v336_v35 = vmax.f32 %v294_v27, 0.0  ;;  %v297_v36 = vadd.f32 %v1657_v57, %v296_v32  ;;  %v320_v37 = vmax.f32 %v230_v19, 0.0  ;;  %v1410_v57 = vld [vmem:[%s2132_s5 + $0x18] sm:$0xff]  }
  0xfa   :  { %v323_v34 = vmax.f32 %v241_v25, 0.0  ;;  %v339_v39 = vmax.f32 %v305_v31, 0.0  ;;  %1363 = vmatprep.subr.bf16.mxu0 %v1410_v57 }
  0xfb   :  { %v321_v38 = vmax.f32 %v233_v29, 0.0  ;;  %v337_v41 = vmax.f32 %v297_v36, 0.0  ;;  %1364 = vmatpush3.bf16.msra.mxu0 %v1410_v57 }
  0xfc   :  { %v347_v40 = vpack.c.bf16 %v323_v34, %v322_v33  ;;  %v355_v43 = vpack.c.bf16 %v339_v39, %v338_v30 }
  0xfd   :  { %v346_v42 = vpack.c.bf16 %v321_v38, %v320_v37  ;;  %v354_v44 = vpack.c.bf16 %v337_v41, %v336_v35 }
  0xff   :  { %1337 = vmatprep.mubr.msk.bf16.mxu1 %vm395_vm1, %v346_v42 }
 0x100   :  { %1338 = vmatmul.mubr.msk.bf16.gmra.mrb[28].mxu1 %vm395_vm1, %v347_v40 }
 0x101   :  { %1341 = vmatprep.mubr.msk.bf16.mxu1 %vm395_vm1, %v1670_v24 }
 0x108   :  { %1342 = vmatmul.mubr.msk.bf16.gmra.mrb[32].mxu1 %vm395_vm1, %v1667_v21  ;;  %v1722_v21 = vld [vmem:[%s2134_s4] ss:$0 sm:$0xff] }
 0x109   :  { %1345 = vmatprep.mubr.msk.bf16.mxu1 %vm395_vm1, %v350_v52 }
 0x110   :  { %1346 = vmatmul.mubr.msk.bf16.gmra.mrb[36].mxu1 %vm395_vm1, %v1681_v49 }
 0x111   :  { %1349 = vmatprep.mubr.msk.bf16.mxu1 %vm395_vm1, %v352_v17 }
 0x118   :  { %1350 = vmatmul.mubr.msk.bf16.gmra.mrb[40].mxu1 %vm395_vm1, %v353_v14 }
 0x119   :  { %1353 = vmatprep.mubr.msk.bf16.mxu1 %vm395_vm1, %v354_v44 }
 0x120   :  { %1354 = vmatmul.mubr.msk.bf16.gmra.mrb[44].mxu1 %vm395_vm1, %v355_v43 }
 0x1bb   :  { %v1327_v24 = vpop.f32.mrb[16].mxu1 }
 0x1bc   :  { %v487_v45 = vadd.f32 %v1327_v24, %v1722_v21  ;;  %v478_v46 = vpop.f32.mrb[17].mxu1 }
 0x1bd   :  { %v479_v47 = vadd.f32 %v1722_v21, %v478_v46  ;;  %v1328_v48 = vpop.f32.mrb[18].mxu1 }
 0x1be   :  { %v490_v49 = vadd.f32 %v1328_v48, %v1722_v21  ;;  %v481_v50 = vpop.f32.mrb[19].mxu1  ;;  %v607_v52 = vmax.f32 %v487_v45, 0.0 }
 0x1bf   :  { %v482_v51 = vadd.f32 %v1722_v21, %v481_v50  ;;  %v605_v54 = vmax.f32 %v479_v47, 0.0 }
 0x1c0   :  { %v608_v53 = vmax.f32 %v490_v49, 0.0 }
 0x1c1   :  { %v606_v55 = vmax.f32 %v482_v51, 0.0 }
 0x1c2   :  { %v638_v56 = vpack.c.bf16 %v608_v53, %v607_v52 }
 0x1c3   :  { %v637_v58 = vpack.c.bf16 %v606_v55, %v605_v54  ;;  %v1331_v59 = vpop.f32.mrb[20].mxu1 }
 0x1c4   :  { %v503_v60 = vadd.f32 %v1331_v59, %v1722_v21  ;;  %v494_v61 = vpop.f32.mrb[21].mxu1 }
 0x1c5   :  { %v495_v62 = vadd.f32 %v1722_v21, %v494_v61  ;;  %v1332_v63 = vpop.f32.mrb[22].mxu1  ;;  %1365 = vmatprep.mubr.msk.bf16.mxu0 %vm395_vm1, %v637_v58 }
 0x1c6   :  { %v506_v0 = vadd.f32 %v1332_v63, %v1722_v21  ;;  %v497_v1 = vpop.f32.mrb[23].mxu1  ;;  %1366 = vmatmul.mubr.msk.bf16.vlgmr.msra.gmra.mrb[16].mxu0 %vm395_vm1, %v638_v56  ;;  %v611_v3 = vmax.f32 %v503_v60, 0.0 }
 0x1c7   :  { %v498_v2 = vadd.f32 %v1722_v21, %v497_v1  ;;  %v609_v5 = vmax.f32 %v495_v62, 0.0 }
 0x1c8   :  { %v612_v4 = vmax.f32 %v506_v0, 0.0 }
 0x1c9   :  { %v610_v6 = vmax.f32 %v498_v2, 0.0 }
 0x1ca   :  { %v640_v7 = vpack.c.bf16 %v612_v4, %v611_v3 }
 0x1cb   :  { %v639_v8 = vpack.c.bf16 %v610_v6, %v609_v5  ;;  %v1335_v9 = vpop.f32.mrb[24].mxu1 }
 0x1cc   :  { %v519_v10 = vadd.f32 %v1335_v9, %v1722_v21  ;;  %v510_v11 = vpop.f32.mrb[25].mxu1 }
 0x1cd   :  { %v511_v12 = vadd.f32 %v1722_v21, %v510_v11  ;;  %v1336_v13 = vpop.f32.mrb[26].mxu1  ;;  %1369 = vmatprep.mubr.msk.bf16.mxu0 %vm395_vm1, %v639_v8 }
 0x1ce   :  { %v522_v14 = vadd.f32 %v1336_v13, %v1722_v21  ;;  %v513_v15 = vpop.f32.mrb[27].mxu1  ;;  %1370 = vmatmul.mubr.msk.bf16.gmra.mrb[20].mxu0 %vm395_vm1, %v640_v7  ;;  %v615_v17 = vmax.f32 %v519_v10, 0.0 }
 0x1cf   :  { %v514_v16 = vadd.f32 %v1722_v21, %v513_v15  ;;  %v613_v19 = vmax.f32 %v511_v12, 0.0 }
 0x1d0   :  { %v616_v18 = vmax.f32 %v522_v14, 0.0 }
 0x1d1   :  { %v614_v20 = vmax.f32 %v514_v16, 0.0 }
 0x1d2   :  { %v642_v22 = vpack.c.bf16 %v616_v18, %v615_v17 }
 0x1d3   :  { %v641_v23 = vpack.c.bf16 %v614_v20, %v613_v19  ;;  %v1339_v25 = vpop.f32.mrb[28].mxu1 }
 0x1d4   :  { %v535_v26 = vadd.f32 %v1339_v25, %v1722_v21  ;;  %v526_v27 = vpop.f32.mrb[29].mxu1 }
 0x1d5   :  { %v527_v28 = vadd.f32 %v1722_v21, %v526_v27  ;;  %v1340_v29 = vpop.f32.mrb[30].mxu1  ;;  %1373 = vmatprep.mubr.msk.bf16.mxu0 %vm395_vm1, %v641_v23 }
 0x1d6   :  { %v538_v30 = vadd.f32 %v1340_v29, %v1722_v21  ;;  %v529_v31 = vpop.f32.mrb[31].mxu1  ;;  %1374 = vmatmul.mubr.msk.bf16.gmra.mrb[24].mxu0 %vm395_vm1, %v642_v22  ;;  %v619_v33 = vmax.f32 %v535_v26, 0.0 }
 0x1d7   :  { %v530_v32 = vadd.f32 %v1722_v21, %v529_v31  ;;  %v617_v35 = vmax.f32 %v527_v28, 0.0 }
 0x1d8   :  { %v620_v34 = vmax.f32 %v538_v30, 0.0 }
 0x1d9   :  { %v618_v36 = vmax.f32 %v530_v32, 0.0  ;;  %v1775_v32 = vld [vmem:[%s2135_s6] ss:$0 sm:$0xff] }
 0x1da   :  { %v644_v37 = vpack.c.bf16 %v620_v34, %v619_v33 }
 0x1db   :  { %v643_v38 = vpack.c.bf16 %v618_v36, %v617_v35  ;;  %v1343_v39 = vpop.f32.mrb[32].mxu1 }
 0x1dc   :  { %v551_v40 = vadd.f32 %v1343_v39, %v1722_v21  ;;  %v542_v41 = vpop.f32.mrb[33].mxu1 }
 0x1dd   :  { %v543_v42 = vadd.f32 %v1722_v21, %v542_v41  ;;  %v1344_v43 = vpop.f32.mrb[34].mxu1  ;;  %1377 = vmatprep.mubr.msk.bf16.mxu0 %vm395_vm1, %v643_v38 }
 0x1de   :  { %v554_v44 = vadd.f32 %v1344_v43, %v1722_v21  ;;  %v545_v57 = vpop.f32.mrb[35].mxu1  ;;  %1378 = vmatmul.mubr.msk.bf16.gmra.mrb[28].mxu0 %vm395_vm1, %v644_v37  ;;  %v623_v45 = vmax.f32 %v551_v40, 0.0 }
 0x1df   :  { %v546_v24 = vadd.f32 %v1722_v21, %v545_v57  ;;  %v621_v47 = vmax.f32 %v543_v42, 0.0 }
 0x1e0   :  { %v624_v46 = vmax.f32 %v554_v44, 0.0 }
 0x1e1   :  { %v622_v48 = vmax.f32 %v546_v24, 0.0 }
 0x1e2   :  { %v646_v49 = vpack.c.bf16 %v624_v46, %v623_v45 }
 0x1e3   :  { %v645_v50 = vpack.c.bf16 %v622_v48, %v621_v47  ;;  %v1347_v51 = vpop.f32.mrb[36].mxu1 }
 0x1e4   :  { %v567_v52 = vadd.f32 %v1347_v51, %v1722_v21  ;;  %v558_v53 = vpop.f32.mrb[37].mxu1 }
 0x1e5   :  { %v559_v54 = vadd.f32 %v1722_v21, %v558_v53  ;;  %v1348_v55 = vpop.f32.mrb[38].mxu1  ;;  %1381 = vmatprep.mubr.msk.bf16.mxu0 %vm395_vm1, %v645_v50 }
 0x1e6   :  { %v570_v56 = vadd.f32 %v1348_v55, %v1722_v21  ;;  %v561_v58 = vpop.f32.mrb[39].mxu1  ;;  %1382 = vmatmul.mubr.msk.bf16.gmra.mrb[32].mxu0 %vm395_vm1, %v646_v49  ;;  %v627_v60 = vmax.f32 %v567_v52, 0.0 }
 0x1e7   :  { %v562_v59 = vadd.f32 %v1722_v21, %v561_v58  ;;  %v625_v62 = vmax.f32 %v559_v54, 0.0 }
 0x1e8   :  { %v628_v61 = vmax.f32 %v570_v56, 0.0 }
 0x1e9   :  { %v626_v63 = vmax.f32 %v562_v59, 0.0 }
 0x1ea   :  { %v648_v0 = vpack.c.bf16 %v628_v61, %v627_v60 }
 0x1eb   :  { %v647_v1 = vpack.c.bf16 %v626_v63, %v625_v62  ;;  %v1351_v2 = vpop.f32.mrb[40].mxu1 }
 0x1ec   :  { %v583_v3 = vadd.f32 %v1351_v2, %v1722_v21  ;;  %v574_v4 = vpop.f32.mrb[41].mxu1 }
 0x1ed   :  { %v575_v5 = vadd.f32 %v1722_v21, %v574_v4  ;;  %v1352_v6 = vpop.f32.mrb[42].mxu1  ;;  %1385 = vmatprep.mubr.msk.bf16.mxu0 %vm395_vm1, %v647_v1 }
 0x1ee   :  { %v586_v7 = vadd.f32 %v1352_v6, %v1722_v21  ;;  %v577_v8 = vpop.f32.mrb[43].mxu1  ;;  %1386 = vmatmul.mubr.msk.bf16.gmra.mrb[36].mxu0 %vm395_vm1, %v648_v0  ;;  %v631_v10 = vmax.f32 %v583_v3, 0.0 }
 0x1ef   :  { %v578_v9 = vadd.f32 %v1722_v21, %v577_v8  ;;  %v629_v12 = vmax.f32 %v575_v5, 0.0 }
 0x1f0   :  { %v632_v11 = vmax.f32 %v586_v7, 0.0 }
 0x1f1   :  { %v630_v13 = vmax.f32 %v578_v9, 0.0 }
 0x1f2   :  { %v650_v14 = vpack.c.bf16 %v632_v11, %v631_v10 }
 0x1f3   :  { %v649_v15 = vpack.c.bf16 %v630_v13, %v629_v12  ;;  %v1355_v16 = vpop.f32.mrb[44].mxu1 }
 0x1f4   :  { %v599_v17 = vadd.f32 %v1355_v16, %v1722_v21  ;;  %v590_v18 = vpop.f32.mrb[45].mxu1 }
 0x1f5   :  { %v591_v19 = vadd.f32 %v1722_v21, %v590_v18  ;;  %v1356_v20 = vpop.f32.mrb[46].mxu1  ;;  %1389 = vmatprep.mubr.msk.bf16.mxu0 %vm395_vm1, %v649_v15 }
 0x1f6   :  { %v602_v22 = vadd.f32 %v1356_v20, %v1722_v21  ;;  %v593_v23 = vpop.f32.mrb[47].mxu1  ;;  %1390 = vmatmul.mubr.msk.bf16.gmra.mrb[40].mxu0 %vm395_vm1, %v650_v14  ;;  %v635_v26 = vmax.f32 %v599_v17, 0.0 }
 0x1f7   :  { %v594_v25 = vadd.f32 %v1722_v21, %v593_v23  ;;  %v633_v28 = vmax.f32 %v591_v19, 0.0 }
 0x1f8   :  { %v636_v27 = vmax.f32 %v602_v22, 0.0 }
 0x1f9   :  { %v634_v29 = vmax.f32 %v594_v25, 0.0 }
 0x1fa   :  { %v652_v30 = vpack.c.bf16 %v636_v27, %v635_v26 }
 0x1fb   :  { %v651_v31 = vpack.c.bf16 %v634_v29, %v633_v28 }
 0x1fd   :  { %1393 = vmatprep.mubr.msk.bf16.mxu0 %vm395_vm1, %v651_v31 }
 0x1fe   :  { %1394 = vmatmul.mubr.msk.bf16.gmra.mrb[44].mxu0 %vm395_vm1, %v652_v30 }
 0x299   :  { %v1367_v33 = vpop.f32.mrb[16].mxu0 }
 0x29a   :  { %v1778_v34 = vadd.f32 %v1367_v33, %v1775_v32  ;;  %v774_v21 = vpop.f32.mrb[17].mxu0 }
 0x29b   :  { %v1781_v35 = vadd.f32 %v1775_v32, %v774_v21  ;;  %v1368_v36 = vpop.f32.mrb[18].mxu0 }
 0x29c   :  { %v1784_v37 = vadd.f32 %v1368_v36, %v1775_v32  ;;  %v777_v38 = vpop.f32.mrb[19].mxu0  ;;  %v903_v39 = vmul.f32 %v1778_v34, %v1778_v34 }
 0x29d   :  { %v1789_v40 = vadd.f32 %v1775_v32, %v777_v38  ;;  %v901_v41 = vmul.f32 %v1781_v35, %v1781_v35 }
 0x29e   :  { %v940_v42 = vsel %vm933_vm2, %v903_v39, 0.0  ;;  %v904_v43 = vmul.f32 %v1784_v37, %v1784_v37 }
 0x29f   :  { %941 = vadd.xlane.f32.xlu1 %v940_v42  ;;  %v934_v44 = vsel %vm933_vm2, %v901_v41, 0.0  ;;  %v902_v57 = vmul.f32 %v1789_v40, %v1789_v40 }
 0x2a0   :  { %935 = vadd.xlane.f32.xlu0 %v934_v44  ;;  %v943_v47 = vsel %vm933_vm2, %v904_v43, 0.0 }
 0x2a1   :  { %v1371_v24 = vpop.f32.mrb[20].mxu0  ;;  %v937_v50 = vsel %vm933_vm2, %v902_v57, 0.0 }
 0x2a2   :  { %v1800_v45 = vadd.f32 %v1371_v24, %v1775_v32  ;;  %v790_v46 = vpop.f32.mrb[21].mxu0 }
 0x2a3   :  { %v1804_v48 = vadd.f32 %v1775_v32, %v790_v46  ;;  %944 = vadd.xlane.f32.xlu1 %v943_v47  ;;  %v1372_v49 = vpop.f32.mrb[22].mxu0 }
 0x2a4   :  { %v1808_v51 = vadd.f32 %v1372_v49, %v1775_v32  ;;  %v793_v52 = vpop.f32.mrb[23].mxu0  ;;  %938 = vadd.xlane.f32.xlu0 %v937_v50  ;;  %v907_v53 = vmul.f32 %v1800_v45, %v1800_v45 }
 0x2a5   :  { %v1813_v54 = vadd.f32 %v1775_v32, %v793_v52  ;;  %v905_v58 = vmul.f32 %v1804_v48, %v1804_v48 }
 0x2a6   :  { %v952_v55 = vsel %vm933_vm2, %v907_v53, 0.0  ;;  %v908_v56 = vmul.f32 %v1808_v51, %v1808_v51 }
 0x2a7   :  { %v906_v60 = vmul.f32 %v1813_v54, %v1813_v54  ;;  %v946_v2 = vsel %vm933_vm2, %v905_v58, 0.0 }
 0x2a8   :  { %953 = vadd.xlane.f32.xlu0 %v952_v55  ;;  %v955_v59 = vsel %vm933_vm2, %v908_v56, 0.0 }
 0x2a9   :  { %956 = vadd.xlane.f32.xlu1 %v955_v59  ;;  %v1375_v61 = vpop.f32.mrb[24].mxu0  ;;  %v949_v5 = vsel %vm933_vm2, %v906_v60, 0.0 }
 0x2aa   :  { %v1824_v62 = vadd.f32 %v1375_v61, %v1775_v32  ;;  %v806_v63 = vpop.f32.mrb[25].mxu0 }
 0x2ab   :  { %v1827_v0 = vadd.f32 %v1775_v32, %v806_v63  ;;  %v1376_v1 = vpop.f32.mrb[26].mxu0 }
 0x2ac   :  { %v1831_v3 = vadd.f32 %v1376_v1, %v1775_v32  ;;  %v809_v4 = vpop.f32.mrb[27].mxu0  ;;  %947 = vadd.xlane.f32.xlu0 %v946_v2  ;;  %v911_v6 = vmul.f32 %v1824_v62, %v1824_v62 }
 0x2ad   :  { %v1837_v7 = vadd.f32 %v1775_v32, %v809_v4  ;;  %950 = vadd.xlane.f32.xlu1 %v949_v5  ;;  %v909_v10 = vmul.f32 %v1827_v0, %v1827_v0 }
 0x2ae   :  { %v964_v8 = vsel %vm933_vm2, %v911_v6, 0.0  ;;  %v912_v9 = vmul.f32 %v1831_v3, %v1831_v3 }
 0x2af   :  { %v910_v12 = vmul.f32 %v1837_v7, %v1837_v7  ;;  %v958_v18 = vsel %vm933_vm2, %v909_v10, 0.0 }
 0x2b0   :  { %965 = vadd.xlane.f32.xlu0 %v964_v8  ;;  %v967_v11 = vsel %vm933_vm2, %v912_v9, 0.0 }
 0x2b1   :  { %v1379_v13 = vpop.f32.mrb[28].mxu0  ;;  %968 = vadd.xlane.f32.xlu1 %v967_v11  ;;  %v961_v22 = vsel %vm933_vm2, %v910_v12, 0.0 }
 0x2b2   :  { %v1848_v14 = vadd.f32 %v1379_v13, %v1775_v32  ;;  %v822_v15 = vpop.f32.mrb[29].mxu0 }
 0x2b3   :  { %v1851_v16 = vadd.f32 %v1775_v32, %v822_v15  ;;  %v1380_v17 = vpop.f32.mrb[30].mxu0 }
 0x2b4   :  { %v1855_v19 = vadd.f32 %v1380_v17, %v1775_v32  ;;  %v825_v20 = vpop.f32.mrb[31].mxu0  ;;  %959 = vadd.xlane.f32.xlu0 %v958_v18  ;;  %v915_v23 = vmul.f32 %v1848_v14, %v1848_v14 }
 0x2b5   :  { %v1861_v25 = vadd.f32 %v1775_v32, %v825_v20  ;;  %962 = vadd.xlane.f32.xlu1 %v961_v22  ;;  %v913_v28 = vmul.f32 %v1851_v16, %v1851_v16 }
 0x2b6   :  { %v976_v26 = vsel %vm933_vm2, %v915_v23, 0.0  ;;  %v916_v27 = vmul.f32 %v1855_v19, %v1855_v19 }
 0x2b7   :  { %v914_v30 = vmul.f32 %v1861_v25, %v1861_v25  ;;  %v970_v39 = vsel %vm933_vm2, %v913_v28, 0.0 }
 0x2b8   :  { %977 = vadd.xlane.f32.xlu0 %v976_v26  ;;  %v979_v29 = vsel %vm933_vm2, %v916_v27, 0.0 }
 0x2b9   :  { %v1383_v31 = vpop.f32.mrb[32].mxu0  ;;  %980 = vadd.xlane.f32.xlu1 %v979_v29  ;;  %v973_v43 = vsel %vm933_vm2, %v914_v30, 0.0 }
 0x2ba   :  { %v1872_v33 = vadd.f32 %v1383_v31, %v1775_v32  ;;  %v838_v21 = vpop.f32.mrb[33].mxu0 }
 0x2bb   :  { %v1875_v36 = vadd.f32 %v1775_v32, %v838_v21  ;;  %v1384_v38 = vpop.f32.mrb[34].mxu0 }
 0x2bc   :  { %v1879_v41 = vadd.f32 %v1384_v38, %v1775_v32  ;;  %v841_v42 = vpop.f32.mrb[35].mxu0  ;;  %971 = vadd.xlane.f32.xlu0 %v970_v39  ;;  %v919_v44 = vmul.f32 %v1872_v33, %v1872_v33 }
 0x2bd   :  { %v1885_v57 = vadd.f32 %v1775_v32, %v841_v42  ;;  %974 = vadd.xlane.f32.xlu1 %v973_v43  ;;  %v917_v47 = vmul.f32 %v1875_v36, %v1875_v36 }
 0x2be   :  { %v988_v24 = vsel %vm933_vm2, %v919_v44, 0.0  ;;  %v920_v46 = vmul.f32 %v1879_v41, %v1879_v41 }
 0x2bf   :  { %v918_v50 = vmul.f32 %v1885_v57, %v1885_v57  ;;  %v982_v59 = vsel %vm933_vm2, %v917_v47, 0.0 }
 0x2c0   :  { %989 = vadd.xlane.f32.xlu0 %v988_v24  ;;  %v991_v49 = vsel %vm933_vm2, %v920_v46, 0.0 }
 0x2c1   :  { %v1387_v52 = vpop.f32.mrb[36].mxu0  ;;  %992 = vadd.xlane.f32.xlu1 %v991_v49  ;;  %v985_v63 = vsel %vm933_vm2, %v918_v50, 0.0 }
 0x2c2   :  { %v1896_v53 = vadd.f32 %v1387_v52, %v1775_v32  ;;  %v854_v55 = vpop.f32.mrb[37].mxu0 }
 0x2c3   :  { %v1899_v56 = vadd.f32 %v1775_v32, %v854_v55  ;;  %v1388_v58 = vpop.f32.mrb[38].mxu0 }
 0x2c4   :  { %v1903_v60 = vadd.f32 %v1388_v58, %v1775_v32  ;;  %v857_v61 = vpop.f32.mrb[39].mxu0  ;;  %983 = vadd.xlane.f32.xlu0 %v982_v59  ;;  %v923_v1 = vmul.f32 %v1896_v53, %v1896_v53 }
 0x2c5   :  { %v1909_v2 = vadd.f32 %v1775_v32, %v857_v61  ;;  %986 = vadd.xlane.f32.xlu1 %v985_v63  ;;  %v921_v6 = vmul.f32 %v1899_v56, %v1899_v56 }
 0x2c6   :  { %v1000_v4 = vsel %vm933_vm2, %v923_v1, 0.0  ;;  %v924_v5 = vmul.f32 %v1903_v60, %v1903_v60 }
 0x2c7   :  { %v922_v9 = vmul.f32 %v1909_v2, %v1909_v2  ;;  %v994_v17 = vsel %vm933_vm2, %v921_v6, 0.0 }
 0x2c8   :  { %1001 = vadd.xlane.f32.xlu0 %v1000_v4  ;;  %v1003_v8 = vsel %vm933_vm2, %v924_v5, 0.0 }
 0x2c9   :  { %v1391_v10 = vpop.f32.mrb[40].mxu0  ;;  %1004 = vadd.xlane.f32.xlu1 %v1003_v8  ;;  %v997_v22 = vsel %vm933_vm2, %v922_v9, 0.0 }
 0x2ca   :  { %v1920_v11 = vadd.f32 %v1391_v10, %v1775_v32  ;;  %v870_v12 = vpop.f32.mrb[41].mxu0 }
 0x2cb   :  { %v1923_v13 = vadd.f32 %v1775_v32, %v870_v12  ;;  %v1392_v15 = vpop.f32.mrb[42].mxu0 }
 0x2cc   :  { %v1927_v18 = vadd.f32 %v1392_v15, %v1775_v32  ;;  %v873_v20 = vpop.f32.mrb[43].mxu0  ;;  %995 = vadd.xlane.f32.xlu0 %v994_v17  ;;  %v927_v23 = vmul.f32 %v1920_v11, %v1920_v11 }
 0x2cd   :  { %v1933_v26 = vadd.f32 %v1775_v32, %v873_v20  ;;  %998 = vadd.xlane.f32.xlu1 %v997_v22  ;;  %v925_v29 = vmul.f32 %v1923_v13, %v1923_v13 }
 0x2ce   :  { %v1012_v27 = vsel %vm933_vm2, %v927_v23, 0.0  ;;  %v928_v28 = vmul.f32 %v1927_v18, %v1927_v18 }
 0x2cf   :  { %v926_v31 = vmul.f32 %v1933_v26, %v1933_v26  ;;  %v1006_v44 = vsel %vm933_vm2, %v925_v29, 0.0 }
 0x2d0   :  { %1013 = vadd.xlane.f32.xlu0 %v1012_v27  ;;  %v1015_v30 = vsel %vm933_vm2, %v928_v28, 0.0 }
 0x2d1   :  { %v1395_v21 = vpop.f32.mrb[44].mxu0  ;;  %1016 = vadd.xlane.f32.xlu1 %v1015_v30  ;;  %v1009_v46 = vsel %vm933_vm2, %v926_v31, 0.0 }
 0x2d2   :  { %v886_v38 = vpop.f32.mrb[45].mxu0  ;;  %v1944_v39 = vadd.f32 %v1395_v21, %v1775_v32 }
 0x2d3   :  { %v1947_v42 = vadd.f32 %v1775_v32, %v886_v38  ;;  %v1396_v43 = vpop.f32.mrb[46].mxu0 }
 0x2d4   :  { %v889_v24 = vpop.f32.mrb[47].mxu0  ;;  %1007 = vadd.xlane.f32.xlu0 %v1006_v44  ;;  %v1952_v47 = vadd.f32 %v1396_v43, %v1775_v32  ;;  %v931_v58 = vmul.f32 %v1944_v39, %v1944_v39 }
 0x2d5   :  { %v1955_v49 = vadd.f32 %v1775_v32, %v889_v24  ;;  %1010 = vadd.xlane.f32.xlu1 %v1009_v46  ;;  %v929_v50 = vmul.f32 %v1947_v42, %v1947_v42 }
 0x2d6   :  { %v932_v61 = vmul.f32 %v1952_v47, %v1952_v47  ;;  %v1024_v32 = vsel %vm933_vm2, %v931_v58, 0.0 }
 0x2d7   :  { %v1018_v52 = vsel %vm933_vm2, %v929_v50, 0.0  ;;  %v930_v55 = vmul.f32 %v1955_v49, %v1955_v49 }
 0x2d8   :  { %1019 = vadd.xlane.f32.xlu0 %v1018_v52  ;;  %v1027_v63 = vsel %vm933_vm2, %v932_v61, 0.0 }
 0x2d9   :  { %v1021_v59 = vsel %vm933_vm2, %v930_v55, 0.0 }
 0x2da   :  { %1022 = vadd.xlane.f32.xlu1 %v1021_v59 }
 0x2dc   :  { %1025 = vadd.xlane.f32.xlu0 %v1024_v32 }
 0x2de   :  { %1028 = vadd.xlane.f32.xlu1 %v1027_v63 }
 0x32c   :  { %v942_v1 = vpop.xlane.xlu1 %941 }
 0x32d   :  { %v1032_v4 = vmax.f32 %v942_v1, 1e-24  ;;  %v936_v5 = vpop.xlane.xlu0 %935 }
 0x32e   :  { %v1030_v6 = vmax.f32 %v936_v5, 1e-24 }
 0x32f   :  { %1411 = vrsqrt.f32 %v1032_v4 }
 0x330   :  { %1413 = vrsqrt.f32 %v1030_v6  ;;  %v945_v8 = vpop.xlane.xlu1 %944 }
 0x331   :  { %v1033_v9 = vmax.f32 %v945_v8, 1e-24  ;;  %v939_v10 = vpop.xlane.xlu0 %938 }
 0x332   :  { %v1031_v12 = vmax.f32 %v939_v10, 1e-24 }
 0x333   :  { %1415 = vrsqrt.f32 %v1033_v9 }
 0x334   :  { %1417 = vrsqrt.f32 %v1031_v12 }
 0x335   :  { %v954_v15 = vpop.xlane.xlu0 %953 }
 0x336   :  { %v1036_v17 = vmax.f32 %v954_v15, 1e-24  ;;  %v957_v20 = vpop.xlane.xlu1 %956 }
 0x337   :  { %v1037_v22 = vmax.f32 %v957_v20, 1e-24 }
 0x338   :  { %1419 = vrsqrt.f32 %v1036_v17 }
 0x339   :  { %v1412_v23 = vpop.eup %1411  ;;  %1421 = vrsqrt.f32 %v1037_v22  ;;  %v948_v27 = vpop.xlane.xlu0 %947 }
 0x33a   :  { %v1414_v28 = vpop.eup %1413  ;;  %v1096_v29 = vmul.f32 %v1412_v23, %v1778_v34  ;;  %v1034_v30 = vmax.f32 %v948_v27, 1e-24  ;;  %v951_v31 = vpop.xlane.xlu1 %950 }
 0x33b   :  { %v1094_v21 = vmul.f32 %v1414_v28, %v1781_v35  ;;  %v1035_v38 = vmax.f32 %v951_v31, 1e-24 }
 0x33c   :  { %1128 = vst.msk [vmem:[%s2136_s7 + $0x10] sm:$0xff] %vm933_vm2, %v1096_v29  ;;  %1423 = vrsqrt.f32 %v1034_v30 }
 0x33d   :  { %v1416_v43 = vpop.eup %1415  ;;  %1126 = vst.msk [vmem:[%s2136_s7] sm:$0xff] %vm933_vm2, %v1094_v21  ;;  %1425 = vrsqrt.f32 %v1035_v38  ;;  %v966_v44 = vpop.xlane.xlu0 %965 }
 0x33e   :  { %v1418_v34 = vpop.eup %1417  ;;  %v1097_v24 = vmul.f32 %v1416_v43, %v1784_v37  ;;  %v1040_v46 = vmax.f32 %v966_v44, 1e-24  ;;  %v969_v35 = vpop.xlane.xlu1 %968 }
 0x33f   :  { %v1095_v50 = vmul.f32 %v1418_v34, %v1789_v40  ;;  %v1041_v52 = vmax.f32 %v969_v35, 1e-24 }
 0x340   :  { %1129 = vst.msk [vmem:[%s2136_s7 + $0x18] sm:$0xff] %vm933_vm2, %v1097_v24  ;;  %1427 = vrsqrt.f32 %v1040_v46 }
 0x341   :  { %1127 = vst.msk [vmem:[%s2136_s7 + $0x8] sm:$0xff] %vm933_vm2, %v1095_v50  ;;  %1429 = vrsqrt.f32 %v1041_v52  ;;  %v960_v55 = vpop.xlane.xlu0 %959 }
 0x342   :  { %v1420_v58 = vpop.eup %1419  ;;  %v1038_v37 = vmax.f32 %v960_v55, 1e-24  ;;  %v963_v59 = vpop.xlane.xlu1 %962 }
 0x343   :  { %v1422_v61 = vpop.eup %1421  ;;  %v1100_v40 = vmul.f32 %v1420_v58, %v1800_v45  ;;  %v1039_v32 = vmax.f32 %v963_v59, 1e-24 }
 0x344   :  { %v1101_v63 = vmul.f32 %v1422_v61, %v1808_v51  ;;  %1431 = vrsqrt.f32 %v1038_v37 }
 0x345   :  { %1132 = vst.msk [vmem:[%s2136_s7 + $0x30] sm:$0xff] %vm933_vm2, %v1100_v40  ;;  %1433 = vrsqrt.f32 %v1039_v32  ;;  %v978_v1 = vpop.xlane.xlu0 %977 }
 0x346   :  { %v1424_v4 = vpop.eup %1423  ;;  %1133 = vst.msk [vmem:[%s2136_s7 + $0x38] sm:$0xff] %vm933_vm2, %v1101_v63  ;;  %v1044_v5 = vmax.f32 %v978_v1, 1e-24  ;;  %v981_v6 = vpop.xlane.xlu1 %980 }
 0x347   :  { %v1426_v45 = vpop.eup %1425  ;;  %v1098_v8 = vmul.f32 %v1424_v4, %v1804_v48  ;;  %v1045_v51 = vmax.f32 %v981_v6, 1e-24 }
 0x348   :  { %v1099_v9 = vmul.f32 %v1426_v45, %v1813_v54  ;;  %1435 = vrsqrt.f32 %v1044_v5 }
 0x349   :  { %1130 = vst.msk [vmem:[%s2136_s7 + $0x20] sm:$0xff] %vm933_vm2, %v1098_v8  ;;  %1437 = vrsqrt.f32 %v1045_v51  ;;  %v972_v10 = vpop.xlane.xlu0 %971 }
 0x34a   :  { %v1428_v12 = vpop.eup %1427  ;;  %1131 = vst.msk [vmem:[%s2136_s7 + $0x28] sm:$0xff] %vm933_vm2, %v1099_v9  ;;  %v1042_v15 = vmax.f32 %v972_v10, 1e-24  ;;  %v975_v17 = vpop.xlane.xlu1 %974 }
 0x34b   :  { %v1430_v48 = vpop.eup %1429  ;;  %v1104_v20 = vmul.f32 %v1428_v12, %v1824_v62  ;;  %v1043_v54 = vmax.f32 %v975_v17, 1e-24 }
 0x34c   :  { %v1105_v22 = vmul.f32 %v1430_v48, %v1831_v3  ;;  %1439 = vrsqrt.f32 %v1042_v15 }
 0x34d   :  { %1136 = vst.msk [vmem:[%s2136_s7 + $0x50] sm:$0xff] %vm933_vm2, %v1104_v20  ;;  %1441 = vrsqrt.f32 %v1043_v54  ;;  %v990_v23 = vpop.xlane.xlu0 %989 }
 0x34e   :  { %v1432_v27 = vpop.eup %1431  ;;  %1137 = vst.msk [vmem:[%s2136_s7 + $0x58] sm:$0xff] %vm933_vm2, %v1105_v22  ;;  %v1048_v28 = vmax.f32 %v990_v23, 1e-24  ;;  %v993_v29 = vpop.xlane.xlu1 %992 }
 0x34f   :  { %v1434_v62 = vpop.eup %1433  ;;  %v1102_v30 = vmul.f32 %v1432_v27, %v1827_v0  ;;  %v1049_v3 = vmax.f32 %v993_v29, 1e-24 }
 0x350   :  { %v1103_v31 = vmul.f32 %v1434_v62, %v1837_v7  ;;  %1443 = vrsqrt.f32 %v1048_v28 }
 0x351   :  { %1134 = vst.msk [vmem:[%s2136_s7 + $0x40] sm:$0xff] %vm933_vm2, %v1102_v30  ;;  %1445 = vrsqrt.f32 %v1049_v3  ;;  %v984_v21 = vpop.xlane.xlu0 %983 }
 0x352   :  { %v1436_v38 = vpop.eup %1435  ;;  %1135 = vst.msk [vmem:[%s2136_s7 + $0x48] sm:$0xff] %vm933_vm2, %v1103_v31  ;;  %v1046_v43 = vmax.f32 %v984_v21, 1e-24  ;;  %v987_v44 = vpop.xlane.xlu1 %986 }
 0x353   :  { %v1438_v0 = vpop.eup %1437  ;;  %v1108_v34 = vmul.f32 %v1436_v38, %v1848_v14  ;;  %v1047_v7 = vmax.f32 %v987_v44, 1e-24 }
 0x354   :  { %v1109_v24 = vmul.f32 %v1438_v0, %v1855_v19  ;;  %1447 = vrsqrt.f32 %v1046_v43 }
 0x355   :  { %1140 = vst.msk [vmem:[%s2136_s7 + $0x70] sm:$0xff] %vm933_vm2, %v1108_v34  ;;  %1449 = vrsqrt.f32 %v1047_v7  ;;  %v1002_v46 = vpop.xlane.xlu0 %1001 }
 0x356   :  { %v1440_v35 = vpop.eup %1439  ;;  %1141 = vst.msk [vmem:[%s2136_s7 + $0x78] sm:$0xff] %vm933_vm2, %v1109_v24  ;;  %v1052_v50 = vmax.f32 %v1002_v46, 1e-24  ;;  %v1005_v52 = vpop.xlane.xlu1 %1004 }
 0x357   :  { %v1442_v14 = vpop.eup %1441  ;;  %v1106_v55 = vmul.f32 %v1440_v35, %v1851_v16  ;;  %v1053_v19 = vmax.f32 %v1005_v52, 1e-24 }
 0x358   :  { %v1107_v58 = vmul.f32 %v1442_v14, %v1861_v25  ;;  %1451 = vrsqrt.f32 %v1052_v50 }
 0x359   :  { %1138 = vst.msk [vmem:[%s2136_s7 + $0x60] sm:$0xff] %vm933_vm2, %v1106_v55  ;;  %1453 = vrsqrt.f32 %v1053_v19  ;;  %v996_v37 = vpop.xlane.xlu0 %995 }
 0x35a   :  { %v1444_v59 = vpop.eup %1443  ;;  %1139 = vst.msk [vmem:[%s2136_s7 + $0x68] sm:$0xff] %vm933_vm2, %v1107_v58  ;;  %v1050_v61 = vmax.f32 %v996_v37, 1e-24  ;;  %v999_v40 = vpop.xlane.xlu1 %998 }
 0x35b   :  { %v1446_v16 = vpop.eup %1445  ;;  %v1112_v32 = vmul.f32 %v1444_v59, %v1872_v33  ;;  %v1051_v25 = vmax.f32 %v999_v40, 1e-24 }
 0x35c   :  { %v1113_v63 = vmul.f32 %v1446_v16, %v1879_v41  ;;  %1455 = vrsqrt.f32 %v1050_v61 }
 0x35d   :  { %1144 = vst.msk [vmem:[%s2136_s7 + $0x90] sm:$0xff] %vm933_vm2, %v1112_v32  ;;  %1457 = vrsqrt.f32 %v1051_v25  ;;  %v1014_v1 = vpop.xlane.xlu0 %1013 }
 0x35e   :  { %v1448_v4 = vpop.eup %1447  ;;  %1145 = vst.msk [vmem:[%s2136_s7 + $0x98] sm:$0xff] %vm933_vm2, %v1113_v63  ;;  %v1056_v5 = vmax.f32 %v1014_v1, 1e-24  ;;  %v1017_v6 = vpop.xlane.xlu1 %1016 }
 0x35f   :  { %v1450_v33 = vpop.eup %1449  ;;  %v1110_v45 = vmul.f32 %v1448_v4, %v1875_v36  ;;  %v1057_v41 = vmax.f32 %v1017_v6, 1e-24 }
 0x360   :  { %v1111_v8 = vmul.f32 %v1450_v33, %v1885_v57  ;;  %1459 = vrsqrt.f32 %v1056_v5 }
 0x361   :  { %1142 = vst.msk [vmem:[%s2136_s7 + $0x80] sm:$0xff] %vm933_vm2, %v1110_v45  ;;  %1461 = vrsqrt.f32 %v1057_v41  ;;  %v1008_v51 = vpop.xlane.xlu0 %1007 }
 0x362   :  { %v1452_v9 = vpop.eup %1451  ;;  %1143 = vst.msk [vmem:[%s2136_s7 + $0x88] sm:$0xff] %vm933_vm2, %v1111_v8  ;;  %v1054_v10 = vmax.f32 %v1008_v51, 1e-24  ;;  %v1011_v12 = vpop.xlane.xlu1 %1010 }
 0x363   :  { %v1454_v36 = vpop.eup %1453  ;;  %v1116_v15 = vmul.f32 %v1452_v9, %v1896_v53  ;;  %v1055_v57 = vmax.f32 %v1011_v12, 1e-24 }
 0x364   :  { %v1117_v17 = vmul.f32 %v1454_v36, %v1903_v60  ;;  %1463 = vrsqrt.f32 %v1054_v10 }
 0x365   :  { %1148 = vst.msk [vmem:[%s2136_s7 + $0xb0] sm:$0xff] %vm933_vm2, %v1116_v15  ;;  %1465 = vrsqrt.f32 %v1055_v57  ;;  %v1020_v48 = vpop.xlane.xlu0 %1019 }
 0x366   :  { %v1456_v20 = vpop.eup %1455  ;;  %1149 = vst.msk [vmem:[%s2136_s7 + $0xb8] sm:$0xff] %vm933_vm2, %v1117_v17  ;;  %v1058_v54 = vmax.f32 %v1020_v48, 1e-24 }
 0x367   :  { %v1458_v22 = vpop.eup %1457  ;;  %v1114_v53 = vmul.f32 %v1456_v20, %v1899_v56  ;;  %v1023_v23 = vpop.xlane.xlu1 %1022 }
 0x368   :  { %v1115_v60 = vmul.f32 %v1458_v22, %v1909_v2  ;;  %1467 = vrsqrt.f32 %v1058_v54  ;;  %v1059_v27 = vmax.f32 %v1023_v23, 1e-24 }
 0x369   :  { %1146 = vst.msk [vmem:[%s2136_s7 + $0xa0] sm:$0xff] %vm933_vm2, %v1114_v53  ;;  %v1026_v28 = vpop.xlane.xlu0 %1025 }
 0x36a   :  { %v1460_v29 = vpop.eup %1459  ;;  %1147 = vst.msk [vmem:[%s2136_s7 + $0xa8] sm:$0xff] %vm933_vm2, %v1115_v60  ;;  %1469 = vrsqrt.f32 %v1059_v27  ;;  %v1060_v62 = vmax.f32 %v1026_v28, 1e-24 }
 0x36b   :  { %v1462_v56 = vpop.eup %1461  ;;  %v1120_v30 = vmul.f32 %v1460_v29, %v1920_v11  ;;  %v1029_v2 = vpop.xlane.xlu1 %1028 }
 0x36c   :  { %v1121_v3 = vmul.f32 %v1462_v56, %v1927_v18  ;;  %1471 = vrsqrt.f32 %v1060_v62  ;;  %v1061_v31 = vmax.f32 %v1029_v2, 1e-24 }
 0x36d   :  { %1152 = vst.msk [vmem:[%s2136_s7 + $0xd0] sm:$0xff] %vm933_vm2, %v1120_v30 }
 0x36e   :  { %v1464_v21 = vpop.eup %1463  ;;  %1153 = vst.msk [vmem:[%s2136_s7 + $0xd8] sm:$0xff] %vm933_vm2, %v1121_v3  ;;  %1473 = vrsqrt.f32 %v1061_v31 }
 0x36f   :  { %v1466_v38 = vpop.eup %1465  ;;  %v1118_v11 = vmul.f32 %v1464_v21, %v1923_v13 }
 0x370   :  { %v1119_v43 = vmul.f32 %v1466_v38, %v1933_v26 }
 0x371   :  { %1150 = vst.msk [vmem:[%s2136_s7 + $0xc0] sm:$0xff] %vm933_vm2, %v1118_v11 }
 0x372   :  { %v1468_v18 = vpop.eup %1467  ;;  %1151 = vst.msk [vmem:[%s2136_s7 + $0xc8] sm:$0xff] %vm933_vm2, %v1119_v43 }
 0x373   :  { %v1122_v44 = vmul.f32 %v1468_v18, %v1947_v42 }
 0x374   :  { %v1470_v0 = vpop.eup %1469 }
 0x375   :  { %1154 = vst.msk [vmem:[%s2136_s7 + $0xe0] sm:$0xff] %vm933_vm2, %v1122_v44  ;;  %v1123_v13 = vmul.f32 %v1470_v0, %v1955_v49 }
 0x376   :  { %v1472_v26 = vpop.eup %1471 }
 0x377   :  { %1155 = vst.msk [vmem:[%s2136_s7 + $0xe8] sm:$0xff] %vm933_vm2, %v1123_v13  ;;  %v1124_v34 = vmul.f32 %v1472_v26, %v1944_v39 }
 0x378   :  { %v1474_v7 = vpop.eup %1473 }
 0x379   :  { %1156 = vst.msk [vmem:[%s2136_s7 + $0xf0] sm:$0xff] %vm933_vm2, %v1124_v34  ;;  %v1125_v42 = vmul.f32 %v1474_v7, %v1952_v47 }
 0x37b   :  { %1157 = vst.msk [vmem:[%s2136_s7 + $0xf8] sm:$0xff] %vm933_vm2, %v1125_v42 }

// kernel: tpu_custom_call.1
= control target key start
LH: loop header
LB: loop body
LE: loop exit
PB: predicated region body
PF: predicated region fallthrough
CT: control target
= control target key end

     0   :  { %vm98_vm0 = vcmask 261120   ;;  %vm395_vm1 = vcmask 523264   ;;  %vm933_vm2 = vcmask 130048   ;;  %s2129_s1 = inlined_call_operand.vmem [shape: bf16[32,64], index: 1, kind: input, shape index: {}]   ;;  %s2130_s0 = inlined_call_operand.vmem [shape: f32[256,32], index: 0, kind: input, shape index: {}]   ;;  %s2131_s3 = inlined_call_operand.vmem [shape: bf16[64,64], index: 3, kind: input, shape index: {}]   ;;  %s2132_s5 = inlined_call_operand.vmem [shape: bf16[64,16], index: 5, kind: input, shape index: {}]   ;;  %s2133_s2 = inlined_call_operand.vmem [shape: f32[1,64], index: 2, kind: input, shape index: {}]   ;;  %s2134_s4 = inlined_call_operand.vmem [shape: f32[1,64], index: 4, kind: input, shape index: {}]   ;;  %s2135_s6 = inlined_call_operand.vmem [shape: f32[1,16], index: 6, kind: input, shape index: {}]   ;;  %s2136_s7 = inlined_call_operand.vmem [shape: f32[256,16], index: 7, kind: output, shape index: {}]  }
   0x1   :  { %v1401_v0 = vld [vmem:[%s2129_s1] sm:$0xff]   ;;  %v1402_v1 = vld [vmem:[%s2129_s1 + $0x8] sm:$0xff]   ;;  %v29_v5 = vld [vmem:[%s2130_s0 + $0x10] sm:$0xff] }
   0x2   :  { %1281 = vmatprep.subr.bf16.mxu0 %v1401_v0  ;;  %v27_v2 = vld [vmem:[%s2130_s0] sm:$0xff]  ;;  %v28_v3 = vld [vmem:[%s2130_s0 + $0x8] sm:$0xff]  ;;  %1397 = vmatprep.subr.bf16.mxu1 %v1401_v0  ;;  %v30_v6 = vld [vmem:[%s2130_s0 + $0x18] sm:$0xff] }
   0x3   :  { %1282 = vmatpush3.bf16.msra.mxu0 %v1401_v0  ;;  %v59_v4 = vpack.c.bf16 %v28_v3, %v27_v2  ;;  %1399 = vmatpush3.bf16.msra.mxu1 %v1401_v0  ;;  %v31_v7 = vld [vmem:[%s2130_s0 + $0x20] sm:$0xff]  ;;  %v32_v8 = vld [vmem:[%s2130_s0 + $0x28] sm:$0xff]  ;;  %v60_v9 = vpack.c.bf16 %v30_v6, %v29_v5  ;;  %v45_v14 = vld [vmem:[%s2130_s0 + $0x90] sm:$0xff] }
   0x4   :  { %1283 = vmatprep.subr.bf16.mxu0 %v1402_v1  ;;  %1398 = vmatprep.subr.bf16.mxu1 %v1402_v1  ;;  %v61_v10 = vpack.c.bf16 %v32_v8, %v31_v7  ;;  %v43_v11 = vld [vmem:[%s2130_s0 + $0x80] sm:$0xff]  ;;  %v44_v12 = vld [vmem:[%s2130_s0 + $0x88] sm:$0xff]  ;;  %v46_v15 = vld [vmem:[%s2130_s0 + $0x98] sm:$0xff] }
   0x5   :  { %1285 = vmatprep.mubr.msk.bf16.mxu0 %vm98_vm0, %v59_v4  ;;  %v67_v13 = vpack.c.bf16 %v44_v12, %v43_v11  ;;  %v47_v16 = vld [vmem:[%s2130_s0 + $0xa0] sm:$0xff]  ;;  %v68_v17 = vpack.c.bf16 %v46_v15, %v45_v14  ;;  %v48_v18 = vld [vmem:[%s2130_s0 + $0xa8] sm:$0xff]  ;;  %v33_v19 = vld [vmem:[%s2130_s0 + $0x30] sm:$0xff] }
   0x6   :  { %v34_v20 = vld [vmem:[%s2130_s0 + $0x38] sm:$0xff]  ;;  %v35_v21 = vld [vmem:[%s2130_s0 + $0x40] sm:$0xff]  ;;  %v69_v22 = vpack.c.bf16 %v48_v18, %v47_v16  ;;  %v36_v23 = vld [vmem:[%s2130_s0 + $0x48] sm:$0xff] }
   0x7   :  { %1284 = vmatpush3.bf16.msra.mxu0 %v1402_v1  ;;  %1400 = vmatpush3.bf16.msra.mxu1 %v1402_v1  ;;  %v49_v24 = vld [vmem:[%s2130_s0 + $0xb0] sm:$0xff]  ;;  %v50_v25 = vld [vmem:[%s2130_s0 + $0xb8] sm:$0xff]  ;;  %v51_v26 = vld [vmem:[%s2130_s0 + $0xc0] sm:$0xff]  ;;  %v62_v29 = vpack.c.bf16 %v34_v20, %v33_v19  ;;  %v63_v31 = vpack.c.bf16 %v36_v23, %v35_v21 }
   0x8   :  { %1301 = vmatprep.mubr.msk.bf16.mxu1 %vm98_vm0, %v67_v13  ;;  %v52_v27 = vld [vmem:[%s2130_s0 + $0xc8] sm:$0xff]  ;;  %v1403_v28 = vld [vmem:[%s2131_s3] sm:$0xff]   ;;  %v70_v32 = vpack.c.bf16 %v50_v25, %v49_v24  ;;  %v1405_v34 = vld [vmem:[%s2131_s3 + $0x10] sm:$0xff]  }
   0x9   :  { %v1404_v30 = vld [vmem:[%s2131_s3 + $0x8] sm:$0xff]   ;;  %1317 = vmatprep.subr.bf16.mxu1 %v1403_v28  ;;  %v71_v33 = vpack.c.bf16 %v52_v27, %v51_v26  ;;  %v37_v35 = vld [vmem:[%s2130_s0 + $0x50] sm:$0xff]  ;;  %v38_v36 = vld [vmem:[%s2130_s0 + $0x58] sm:$0xff] }
   0xa   :  { %1286 = vmatmul.mubr.msk.bf16.vlgmr.msra.gmra.mrb[0].mxu0 %vm98_vm0, %v60_v9  ;;  %1302 = vmatmul.mubr.msk.bf16.vlgmr.msra.gmra.mrb[0].mxu1 %vm98_vm0, %v68_v17  ;;  %v39_v37 = vld [vmem:[%s2130_s0 + $0x60] sm:$0xff]  ;;  %v40_v38 = vld [vmem:[%s2130_s0 + $0x68] sm:$0xff]  ;;  %v53_v39 = vld [vmem:[%s2130_s0 + $0xd0] sm:$0xff]  ;;  %v64_v43 = vpack.c.bf16 %v38_v36, %v37_v35 }
   0xb   :  { %1289 = vmatprep.mubr.msk.bf16.mxu0 %vm98_vm0, %v61_v10  ;;  %1305 = vmatprep.mubr.msk.bf16.mxu1 %vm98_vm0, %v69_v22  ;;  %v54_v40 = vld [vmem:[%s2130_s0 + $0xd8] sm:$0xff]  ;;  %v55_v41 = vld [vmem:[%s2130_s0 + $0xe0] sm:$0xff]  ;;  %v56_v42 = vld [vmem:[%s2130_s0 + $0xe8] sm:$0xff]  ;;  %v65_v44 = vpack.c.bf16 %v40_v38, %v39_v37 }
   0xc   :  { %1318 = vmatpush3.bf16.msra.mxu1 %v1403_v28  ;;  %v72_v45 = vpack.c.bf16 %v54_v40, %v53_v39  ;;  %v73_v46 = vpack.c.bf16 %v56_v42, %v55_v41  ;;  %v41_v47 = vld [vmem:[%s2130_s0 + $0x70] sm:$0xff]  ;;  %v42_v48 = vld [vmem:[%s2130_s0 + $0x78] sm:$0xff]  ;;  %v1407_v54 = vld [vmem:[%s2132_s5] sm:$0xff]  }
   0xd   :  { %1319 = vmatprep.subr.bf16.mxu1 %v1404_v30  ;;  %v57_v49 = vld [vmem:[%s2130_s0 + $0xf0] sm:$0xff]  ;;  %v58_v50 = vld [vmem:[%s2130_s0 + $0xf8] sm:$0xff]  ;;  %v66_v51 = vpack.c.bf16 %v42_v48, %v41_v47  ;;  %v1408_v55 = vld [vmem:[%s2132_s5 + $0x8] sm:$0xff]   ;;  %1357 = vmatprep.subr.bf16.mxu0 %v1407_v54 }
   0xe   :  { %v74_v52 = vpack.c.bf16 %v58_v50, %v57_v49  ;;  %v1406_v53 = vld [vmem:[%s2131_s3 + $0x18] sm:$0xff]   ;;  %1358 = vmatpush3.bf16.msra.mxu0 %v1407_v54  ;;  %v1409_v56 = vld [vmem:[%s2132_s5 + $0x10] sm:$0xff]   ;;  %v1657_v57 = vld [vmem:[%s2133_s2] ss:$0 sm:$0xff] }
   0xf   :  { %1359 = vmatprep.subr.bf16.mxu0 %v1408_v55 }
  0x10   :  { %1320 = vmatpush3.bf16.msra.mxu1 %v1404_v30 }
  0x11   :  { %1321 = vmatprep.subr.bf16.mxu1 %v1405_v34 }
  0x12   :  { %1290 = vmatmul.mubr.msk.bf16.gmra.mrb[4].mxu0 %vm98_vm0, %v62_v29  ;;  %1306 = vmatmul.mubr.msk.bf16.gmra.mrb[4].mxu1 %vm98_vm0, %v70_v32 }
  0x13   :  { %1293 = vmatprep.mubr.msk.bf16.mxu0 %vm98_vm0, %v63_v31  ;;  %1309 = vmatprep.mubr.msk.bf16.mxu1 %vm98_vm0, %v71_v33 }
  0x14   :  { %1322 = vmatpush3.bf16.msra.mxu1 %v1405_v34  ;;  %1360 = vmatpush3.bf16.msra.mxu0 %v1408_v55 }
  0x15   :  { %1323 = vmatprep.subr.bf16.mxu1 %v1406_v53  ;;  %1361 = vmatprep.subr.bf16.mxu0 %v1409_v56 }
  0x18   :  { %1324 = vmatpush3.bf16.msra.mxu1 %v1406_v53  ;;  %1362 = vmatpush3.bf16.msra.mxu0 %v1409_v56 }
  0x1a   :  { %1294 = vmatmul.mubr.msk.bf16.gmra.mrb[8].mxu0 %vm98_vm0, %v64_v43  ;;  %1310 = vmatmul.mubr.msk.bf16.gmra.mrb[8].mxu1 %vm98_vm0, %v72_v45 }
  0x1b   :  { %1297 = vmatprep.mubr.msk.bf16.mxu0 %vm98_vm0, %v65_v44  ;;  %1313 = vmatprep.mubr.msk.bf16.mxu1 %vm98_vm0, %v73_v46 }
  0x22   :  { %1298 = vmatmul.mubr.msk.bf16.gmra.mrb[12].mxu0 %vm98_vm0, %v66_v51  ;;  %1314 = vmatmul.mubr.msk.bf16.gmra.mrb[12].mxu1 %vm98_vm0, %v74_v52 }
  0xdd   :  { %v1287_v58 = vpop.f32.mrb[0].mxu0  ;;  %v1303_v61 = vpop.f32.mrb[0].mxu1 }
  0xde   :  { %v190_v59 = vadd.f32 %v1287_v58, %v1657_v57  ;;  %v181_v60 = vpop.f32.mrb[1].mxu0  ;;  %v254_v0 = vadd.f32 %v1303_v61, %v1657_v57  ;;  %v245_v1 = vpop.f32.mrb[1].mxu1 }
  0xdf   :  { %v182_v62 = vadd.f32 %v1657_v57, %v181_v60  ;;  %v1288_v63 = vpop.f32.mrb[2].mxu0  ;;  %v246_v4 = vadd.f32 %v1657_v57, %v245_v1  ;;  %v1304_v5 = vpop.f32.mrb[2].mxu1 }
  0xe0   :  { %v193_v2 = vadd.f32 %v1288_v63, %v1657_v57  ;;  %v184_v3 = vpop.f32.mrb[3].mxu0  ;;  %v326_v7 = vmax.f32 %v254_v0, 0.0  ;;  %v257_v8 = vadd.f32 %v1304_v5, %v1657_v57  ;;  %v248_v9 = vpop.f32.mrb[3].mxu1  ;;  %v310_v10 = vmax.f32 %v190_v59, 0.0 }
  0xe1   :  { %v185_v6 = vadd.f32 %v1657_v57, %v184_v3  ;;  %v324_v12 = vmax.f32 %v246_v4, 0.0  ;;  %v249_v13 = vadd.f32 %v1657_v57, %v248_v9  ;;  %v308_v14 = vmax.f32 %v182_v62, 0.0 }
  0xe2   :  { %v311_v11 = vmax.f32 %v193_v2, 0.0  ;;  %v327_v16 = vmax.f32 %v257_v8, 0.0 }
  0xe3   :  { %v309_v15 = vmax.f32 %v185_v6, 0.0  ;;  %v325_v18 = vmax.f32 %v249_v13, 0.0 }
  0xe4   :  { %v341_v17 = vpack.c.bf16 %v311_v11, %v310_v10  ;;  %v1667_v21 = vpack.c.bf16 %v327_v16, %v326_v7 }
  0xe5   :  { %v340_v19 = vpack.c.bf16 %v309_v15, %v308_v14  ;;  %v1291_v20 = vpop.f32.mrb[4].mxu0  ;;  %v1670_v24 = vpack.c.bf16 %v325_v18, %v324_v12  ;;  %v1307_v25 = vpop.f32.mrb[4].mxu1 }
  0xe6   :  { %v206_v22 = vadd.f32 %v1291_v20, %v1657_v57  ;;  %v197_v23 = vpop.f32.mrb[5].mxu0  ;;  %v270_v28 = vadd.f32 %v1307_v25, %v1657_v57  ;;  %v261_v29 = vpop.f32.mrb[5].mxu1 }
  0xe7   :  { %v198_v26 = vadd.f32 %v1657_v57, %v197_v23  ;;  %v1292_v27 = vpop.f32.mrb[6].mxu0  ;;  %1325 = vmatprep.mubr.msk.bf16.mxu1 %vm395_vm1, %v340_v19  ;;  %v262_v32 = vadd.f32 %v1657_v57, %v261_v29  ;;  %v1308_v33 = vpop.f32.mrb[6].mxu1 }
  0xe8   :  { %v209_v30 = vadd.f32 %v1292_v27, %v1657_v57  ;;  %v200_v31 = vpop.f32.mrb[7].mxu0  ;;  %1326 = vmatmul.mubr.msk.bf16.vlgmr.msra.gmra.mrb[16].mxu1 %vm395_vm1, %v341_v17  ;;  %v330_v35 = vmax.f32 %v270_v28, 0.0  ;;  %v273_v36 = vadd.f32 %v1308_v33, %v1657_v57  ;;  %v264_v37 = vpop.f32.mrb[7].mxu1  ;;  %v314_v38 = vmax.f32 %v206_v22, 0.0 }
  0xe9   :  { %v201_v34 = vadd.f32 %v1657_v57, %v200_v31  ;;  %v328_v40 = vmax.f32 %v262_v32, 0.0  ;;  %v265_v41 = vadd.f32 %v1657_v57, %v264_v37  ;;  %v312_v42 = vmax.f32 %v198_v26, 0.0 }
  0xea   :  { %v315_v39 = vmax.f32 %v209_v30, 0.0  ;;  %v331_v44 = vmax.f32 %v273_v36, 0.0 }
  0xeb   :  { %v313_v43 = vmax.f32 %v201_v34, 0.0  ;;  %v329_v46 = vmax.f32 %v265_v41, 0.0 }
  0xec   :  { %v343_v45 = vpack.c.bf16 %v315_v39, %v314_v38  ;;  %v1681_v49 = vpack.c.bf16 %v331_v44, %v330_v35 }
  0xed   :  { %v342_v47 = vpack.c.bf16 %v313_v43, %v312_v42  ;;  %v1295_v48 = vpop.f32.mrb[8].mxu0  ;;  %v350_v52 = vpack.c.bf16 %v329_v46, %v328_v40  ;;  %v1311_v53 = vpop.f32.mrb[8].mxu1 }
  0xee   :  { %v222_v50 = vadd.f32 %v1295_v48, %v1657_v57  ;;  %v213_v51 = vpop.f32.mrb[9].mxu0  ;;  %v286_v56 = vadd.f32 %v1311_v53, %v1657_v57  ;;  %v277_v58 = vpop.f32.mrb[9].mxu1 }
  0xef   :  { %v214_v54 = vadd.f32 %v1657_v57, %v213_v51  ;;  %v1296_v55 = vpop.f32.mrb[10].mxu0  ;;  %1329 = vmatprep.mubr.msk.bf16.mxu1 %vm395_vm1, %v342_v47  ;;  %v278_v61 = vadd.f32 %v1657_v57, %v277_v58  ;;  %v1312_v62 = vpop.f32.mrb[10].mxu1 }
  0xf0   :  { %v225_v59 = vadd.f32 %v1296_v55, %v1657_v57  ;;  %v216_v60 = vpop.f32.mrb[11].mxu0  ;;  %1330 = vmatmul.mubr.msk.bf16.gmra.mrb[20].mxu1 %vm395_vm1, %v343_v45  ;;  %v334_v0 = vmax.f32 %v286_v56, 0.0  ;;  %v289_v1 = vadd.f32 %v1312_v62, %v1657_v57  ;;  %v280_v2 = vpop.f32.mrb[11].mxu1  ;;  %v318_v3 = vmax.f32 %v222_v50, 0.0 }
  0xf1   :  { %v217_v63 = vadd.f32 %v1657_v57, %v216_v60  ;;  %v332_v5 = vmax.f32 %v278_v61, 0.0  ;;  %v281_v6 = vadd.f32 %v1657_v57, %v280_v2  ;;  %v316_v7 = vmax.f32 %v214_v54, 0.0 }
  0xf2   :  { %v319_v4 = vmax.f32 %v225_v59, 0.0  ;;  %v335_v9 = vmax.f32 %v289_v1, 0.0 }
  0xf3   :  { %v317_v8 = vmax.f32 %v217_v63, 0.0  ;;  %v333_v11 = vmax.f32 %v281_v6, 0.0 }
  0xf4   :  { %v345_v10 = vpack.c.bf16 %v319_v4, %v318_v3  ;;  %v353_v14 = vpack.c.bf16 %v335_v9, %v334_v0 }
  0xf5   :  { %v344_v12 = vpack.c.bf16 %v317_v8, %v316_v7  ;;  %v1299_v13 = vpop.f32.mrb[12].mxu0  ;;  %v352_v17 = vpack.c.bf16 %v333_v11, %v332_v5  ;;  %v1315_v18 = vpop.f32.mrb[12].mxu1 }
  0xf6   :  { %v238_v15 = vadd.f32 %v1299_v13, %v1657_v57  ;;  %v229_v16 = vpop.f32.mrb[13].mxu0  ;;  %v302_v22 = vadd.f32 %v1315_v18, %v1657_v57  ;;  %v293_v23 = vpop.f32.mrb[13].mxu1 }
  0xf7   :  { %v230_v19 = vadd.f32 %v1657_v57, %v229_v16  ;;  %v1300_v20 = vpop.f32.mrb[14].mxu0  ;;  %1333 = vmatprep.mubr.msk.bf16.mxu1 %vm395_vm1, %v344_v12  ;;  %v294_v27 = vadd.f32 %v1657_v57, %v293_v23  ;;  %v1316_v28 = vpop.f32.mrb[14].mxu1 }
  0xf8   :  { %v241_v25 = vadd.f32 %v1300_v20, %v1657_v57  ;;  %v232_v26 = vpop.f32.mrb[15].mxu0  ;;  %1334 = vmatmul.mubr.msk.bf16.gmra.mrb[24].mxu1 %vm395_vm1, %v345_v10  ;;  %v338_v30 = vmax.f32 %v302_v22, 0.0  ;;  %v305_v31 = vadd.f32 %v1316_v28, %v1657_v57  ;;  %v296_v32 = vpop.f32.mrb[15].mxu1  ;;  %v322_v33 = vmax.f32 %v238_v15, 0.0 }
  0xf9   :  { %v233_v29 = vadd.f32 %v1657_v57, %v232_v26  ;;  %v336_v35 = vmax.f32 %v294_v27, 0.0  ;;  %v297_v36 = vadd.f32 %v1657_v57, %v296_v32  ;;  %v320_v37 = vmax.f32 %v230_v19, 0.0  ;;  %v1410_v57 = vld [vmem:[%s2132_s5 + $0x18] sm:$0xff]  }
  0xfa   :  { %v323_v34 = vmax.f32 %v241_v25, 0.0  ;;  %v339_v39 = vmax.f32 %v305_v31, 0.0  ;;  %1363 = vmatprep.subr.bf16.mxu0 %v1410_v57 }
  0xfb   :  { %v321_v38 = vmax.f32 %v233_v29, 0.0  ;;  %v337_v41 = vmax.f32 %v297_v36, 0.0  ;;  %1364 = vmatpush3.bf16.msra.mxu0 %v1410_v57 }
  0xfc   :  { %v347_v40 = vpack.c.bf16 %v323_v34, %v322_v33  ;;  %v355_v43 = vpack.c.bf16 %v339_v39, %v338_v30 }
  0xfd   :  { %v346_v42 = vpack.c.bf16 %v321_v38, %v320_v37  ;;  %v354_v44 = vpack.c.bf16 %v337_v41, %v336_v35 }
  0xff   :  { %1337 = vmatprep.mubr.msk.bf16.mxu1 %vm395_vm1, %v346_v42 }
 0x100   :  { %1338 = vmatmul.mubr.msk.bf16.gmra.mrb[28].mxu1 %vm395_vm1, %v347_v40 }
 0x101   :  { %1341 = vmatprep.mubr.msk.bf16.mxu1 %vm395_vm1, %v1670_v24 }
 0x108   :  { %1342 = vmatmul.mubr.msk.bf16.gmra.mrb[32].mxu1 %vm395_vm1, %v1667_v21  ;;  %v1722_v21 = vld [vmem:[%s2134_s4] ss:$0 sm:$0xff] }
 0x109   :  { %1345 = vmatprep.mubr.msk.bf16.mxu1 %vm395_vm1, %v350_v52 }
 0x110   :  { %1346 = vmatmul.mubr.msk.bf16.gmra.mrb[36].mxu1 %vm395_vm1, %v1681_v49 }
 0x111   :  { %1349 = vmatprep.mubr.msk.bf16.mxu1 %vm395_vm1, %v352_v17 }
 0x118   :  { %1350 = vmatmul.mubr.msk.bf16.gmra.mrb[40].mxu1 %vm395_vm1, %v353_v14 }
 0x119   :  { %1353 = vmatprep.mubr.msk.bf16.mxu1 %vm395_vm1, %v354_v44 }
 0x120   :  { %1354 = vmatmul.mubr.msk.bf16.gmra.mrb[44].mxu1 %vm395_vm1, %v355_v43 }
 0x1bb   :  { %v1327_v24 = vpop.f32.mrb[16].mxu1 }
 0x1bc   :  { %v487_v45 = vadd.f32 %v1327_v24, %v1722_v21  ;;  %v478_v46 = vpop.f32.mrb[17].mxu1 }
 0x1bd   :  { %v479_v47 = vadd.f32 %v1722_v21, %v478_v46  ;;  %v1328_v48 = vpop.f32.mrb[18].mxu1 }
 0x1be   :  { %v490_v49 = vadd.f32 %v1328_v48, %v1722_v21  ;;  %v481_v50 = vpop.f32.mrb[19].mxu1  ;;  %v607_v52 = vmax.f32 %v487_v45, 0.0 }
 0x1bf   :  { %v482_v51 = vadd.f32 %v1722_v21, %v481_v50  ;;  %v605_v54 = vmax.f32 %v479_v47, 0.0 }
 0x1c0   :  { %v608_v53 = vmax.f32 %v490_v49, 0.0 }
 0x1c1   :  { %v606_v55 = vmax.f32 %v482_v51, 0.0 }
 0x1c2   :  { %v638_v56 = vpack.c.bf16 %v608_v53, %v607_v52 }
 0x1c3   :  { %v637_v58 = vpack.c.bf16 %v606_v55, %v605_v54  ;;  %v1331_v59 = vpop.f32.mrb[20].mxu1 }
 0x1c4   :  { %v503_v60 = vadd.f32 %v1331_v59, %v1722_v21  ;;  %v494_v61 = vpop.f32.mrb[21].mxu1 }
 0x1c5   :  { %v495_v62 = vadd.f32 %v1722_v21, %v494_v61  ;;  %v1332_v63 = vpop.f32.mrb[22].mxu1  ;;  %1365 = vmatprep.mubr.msk.bf16.mxu0 %vm395_vm1, %v637_v58 }
 0x1c6   :  { %v506_v0 = vadd.f32 %v1332_v63, %v1722_v21  ;;  %v497_v1 = vpop.f32.mrb[23].mxu1  ;;  %1366 = vmatmul.mubr.msk.bf16.vlgmr.msra.gmra.mrb[16].mxu0 %vm395_vm1, %v638_v56  ;;  %v611_v3 = vmax.f32 %v503_v60, 0.0 }
 0x1c7   :  { %v498_v2 = vadd.f32 %v1722_v21, %v497_v1  ;;  %v609_v5 = vmax.f32 %v495_v62, 0.0 }
 0x1c8   :  { %v612_v4 = vmax.f32 %v506_v0, 0.0 }
 0x1c9   :  { %v610_v6 = vmax.f32 %v498_v2, 0.0 }
 0x1ca   :  { %v640_v7 = vpack.c.bf16 %v612_v4, %v611_v3 }
 0x1cb   :  { %v639_v8 = vpack.c.bf16 %v610_v6, %v609_v5  ;;  %v1335_v9 = vpop.f32.mrb[24].mxu1 }
 0x1cc   :  { %v519_v10 = vadd.f32 %v1335_v9, %v1722_v21  ;;  %v510_v11 = vpop.f32.mrb[25].mxu1 }
 0x1cd   :  { %v511_v12 = vadd.f32 %v1722_v21, %v510_v11  ;;  %v1336_v13 = vpop.f32.mrb[26].mxu1  ;;  %1369 = vmatprep.mubr.msk.bf16.mxu0 %vm395_vm1, %v639_v8 }
 0x1ce   :  { %v522_v14 = vadd.f32 %v1336_v13, %v1722_v21  ;;  %v513_v15 = vpop.f32.mrb[27].mxu1  ;;  %1370 = vmatmul.mubr.msk.bf16.gmra.mrb[20].mxu0 %vm395_vm1, %v640_v7  ;;  %v615_v17 = vmax.f32 %v519_v10, 0.0 }
 0x1cf   :  { %v514_v16 = vadd.f32 %v1722_v21, %v513_v15  ;;  %v613_v19 = vmax.f32 %v511_v12, 0.0 }
 0x1d0   :  { %v616_v18 = vmax.f32 %v522_v14, 0.0 }
 0x1d1   :  { %v614_v20 = vmax.f32 %v514_v16, 0.0 }
 0x1d2   :  { %v642_v22 = vpack.c.bf16 %v616_v18, %v615_v17 }
 0x1d3   :  { %v641_v23 = vpack.c.bf16 %v614_v20, %v613_v19  ;;  %v1339_v25 = vpop.f32.mrb[28].mxu1 }
 0x1d4   :  { %v535_v26 = vadd.f32 %v1339_v25, %v1722_v21  ;;  %v526_v27 = vpop.f32.mrb[29].mxu1 }
 0x1d5   :  { %v527_v28 = vadd.f32 %v1722_v21, %v526_v27  ;;  %v1340_v29 = vpop.f32.mrb[30].mxu1  ;;  %1373 = vmatprep.mubr.msk.bf16.mxu0 %vm395_vm1, %v641_v23 }
 0x1d6   :  { %v538_v30 = vadd.f32 %v1340_v29, %v1722_v21  ;;  %v529_v31 = vpop.f32.mrb[31].mxu1  ;;  %1374 = vmatmul.mubr.msk.bf16.gmra.mrb[24].mxu0 %vm395_vm1, %v642_v22  ;;  %v619_v33 = vmax.f32 %v535_v26, 0.0 }
 0x1d7   :  { %v530_v32 = vadd.f32 %v1722_v21, %v529_v31  ;;  %v617_v35 = vmax.f32 %v527_v28, 0.0 }
 0x1d8   :  { %v620_v34 = vmax.f32 %v538_v30, 0.0 }
 0x1d9   :  { %v618_v36 = vmax.f32 %v530_v32, 0.0  ;;  %v1775_v32 = vld [vmem:[%s2135_s6] ss:$0 sm:$0xff] }
 0x1da   :  { %v644_v37 = vpack.c.bf16 %v620_v34, %v619_v33 }
 0x1db   :  { %v643_v38 = vpack.c.bf16 %v618_v36, %v617_v35  ;;  %v1343_v39 = vpop.f32.mrb[32].mxu1 }
 0x1dc   :  { %v551_v40 = vadd.f32 %v1343_v39, %v1722_v21  ;;  %v542_v41 = vpop.f32.mrb[33].mxu1 }
 0x1dd   :  { %v543_v42 = vadd.f32 %v1722_v21, %v542_v41  ;;  %v1344_v43 = vpop.f32.mrb[34].mxu1  ;;  %1377 = vmatprep.mubr.msk.bf16.mxu0 %vm395_vm1, %v643_v38 }
 0x1de   :  { %v554_v44 = vadd.f32 %v1344_v43, %v1722_v21  ;;  %v545_v57 = vpop.f32.mrb[35].mxu1  ;;  %1378 = vmatmul.mubr.msk.bf16.gmra.mrb[28].mxu0 %vm395_vm1, %v644_v37  ;;  %v623_v45 = vmax.f32 %v551_v40, 0.0 }
 0x1df   :  { %v546_v24 = vadd.f32 %v1722_v21, %v545_v57  ;;  %v621_v47 = vmax.f32 %v543_v42, 0.0 }
 0x1e0   :  { %v624_v46 = vmax.f32 %v554_v44, 0.0 }
 0x1e1   :  { %v622_v48 = vmax.f32 %v546_v24, 0.0 }
 0x1e2   :  { %v646_v49 = vpack.c.bf16 %v624_v46, %v623_v45 }
 0x1e3   :  { %v645_v50 = vpack.c.bf16 %v622_v48, %v621_v47  ;;  %v1347_v51 = vpop.f32.mrb[36].mxu1 }
 0x1e4   :  { %v567_v52 = vadd.f32 %v1347_v51, %v1722_v21  ;;  %v558_v53 = vpop.f32.mrb[37].mxu1 }
 0x1e5   :  { %v559_v54 = vadd.f32 %v1722_v21, %v558_v53  ;;  %v1348_v55 = vpop.f32.mrb[38].mxu1  ;;  %1381 = vmatprep.mubr.msk.bf16.mxu0 %vm395_vm1, %v645_v50 }
 0x1e6   :  { %v570_v56 = vadd.f32 %v1348_v55, %v1722_v21  ;;  %v561_v58 = vpop.f32.mrb[39].mxu1  ;;  %1382 = vmatmul.mubr.msk.bf16.gmra.mrb[32].mxu0 %vm395_vm1, %v646_v49  ;;  %v627_v60 = vmax.f32 %v567_v52, 0.0 }
 0x1e7   :  { %v562_v59 = vadd.f32 %v1722_v21, %v561_v58  ;;  %v625_v62 = vmax.f32 %v559_v54, 0.0 }
 0x1e8   :  { %v628_v61 = vmax.f32 %v570_v56, 0.0 }
 0x1e9   :  { %v626_v63 = vmax.f32 %v562_v59, 0.0 }
 0x1ea   :  { %v648_v0 = vpack.c.bf16 %v628_v61, %v627_v60 }
 0x1eb   :  { %v647_v1 = vpack.c.bf16 %v626_v63, %v625_v62  ;;  %v1351_v2 = vpop.f32.mrb[40].mxu1 }
 0x1ec   :  { %v583_v3 = vadd.f32 %v1351_v2, %v1722_v21  ;;  %v574_v4 = vpop.f32.mrb[41].mxu1 }
 0x1ed   :  { %v575_v5 = vadd.f32 %v1722_v21, %v574_v4  ;;  %v1352_v6 = vpop.f32.mrb[42].mxu1  ;;  %1385 = vmatprep.mubr.msk.bf16.mxu0 %vm395_vm1, %v647_v1 }
 0x1ee   :  { %v586_v7 = vadd.f32 %v1352_v6, %v1722_v21  ;;  %v577_v8 = vpop.f32.mrb[43].mxu1  ;;  %1386 = vmatmul.mubr.msk.bf16.gmra.mrb[36].mxu0 %vm395_vm1, %v648_v0  ;;  %v631_v10 = vmax.f32 %v583_v3, 0.0 }
 0x1ef   :  { %v578_v9 = vadd.f32 %v1722_v21, %v577_v8  ;;  %v629_v12 = vmax.f32 %v575_v5, 0.0 }
 0x1f0   :  { %v632_v11 = vmax.f32 %v586_v7, 0.0 }
 0x1f1   :  { %v630_v13 = vmax.f32 %v578_v9, 0.0 }
 0x1f2   :  { %v650_v14 = vpack.c.bf16 %v632_v11, %v631_v10 }
 0x1f3   :  { %v649_v15 = vpack.c.bf16 %v630_v13, %v629_v12  ;;  %v1355_v16 = vpop.f32.mrb[44].mxu1 }
 0x1f4   :  { %v599_v17 = vadd.f32 %v1355_v16, %v1722_v21  ;;  %v590_v18 = vpop.f32.mrb[45].mxu1 }
 0x1f5   :  { %v591_v19 = vadd.f32 %v1722_v21, %v590_v18  ;;  %v1356_v20 = vpop.f32.mrb[46].mxu1  ;;  %1389 = vmatprep.mubr.msk.bf16.mxu0 %vm395_vm1, %v649_v15 }
 0x1f6   :  { %v602_v22 = vadd.f32 %v1356_v20, %v1722_v21  ;;  %v593_v23 = vpop.f32.mrb[47].mxu1  ;;  %1390 = vmatmul.mubr.msk.bf16.gmra.mrb[40].mxu0 %vm395_vm1, %v650_v14  ;;  %v635_v26 = vmax.f32 %v599_v17, 0.0 }
 0x1f7   :  { %v594_v25 = vadd.f32 %v1722_v21, %v593_v23  ;;  %v633_v28 = vmax.f32 %v591_v19, 0.0 }
 0x1f8   :  { %v636_v27 = vmax.f32 %v602_v22, 0.0 }
 0x1f9   :  { %v634_v29 = vmax.f32 %v594_v25, 0.0 }
 0x1fa   :  { %v652_v30 = vpack.c.bf16 %v636_v27, %v635_v26 }
 0x1fb   :  { %v651_v31 = vpack.c.bf16 %v634_v29, %v633_v28 }
 0x1fd   :  { %1393 = vmatprep.mubr.msk.bf16.mxu0 %vm395_vm1, %v651_v31 }
 0x1fe   :  { %1394 = vmatmul.mubr.msk.bf16.gmra.mrb[44].mxu0 %vm395_vm1, %v652_v30 }
 0x299   :  { %v1367_v33 = vpop.f32.mrb[16].mxu0 }
 0x29a   :  { %v1778_v34 = vadd.f32 %v1367_v33, %v1775_v32  ;;  %v774_v21 = vpop.f32.mrb[17].mxu0 }
 0x29b   :  { %v1781_v35 = vadd.f32 %v1775_v32, %v774_v21  ;;  %v1368_v36 = vpop.f32.mrb[18].mxu0 }
 0x29c   :  { %v1784_v37 = vadd.f32 %v1368_v36, %v1775_v32  ;;  %v777_v38 = vpop.f32.mrb[19].mxu0  ;;  %v903_v39 = vmul.f32 %v1778_v34, %v1778_v34 }
 0x29d   :  { %v1789_v40 = vadd.f32 %v1775_v32, %v777_v38  ;;  %v901_v41 = vmul.f32 %v1781_v35, %v1781_v35 }
 0x29e   :  { %v940_v42 = vsel %vm933_vm2, %v903_v39, 0.0  ;;  %v904_v43 = vmul.f32 %v1784_v37, %v1784_v37 }
 0x29f   :  { %941 = vadd.xlane.f32.xlu1 %v940_v42  ;;  %v934_v44 = vsel %vm933_vm2, %v901_v41, 0.0  ;;  %v902_v57 = vmul.f32 %v1789_v40, %v1789_v40 }
 0x2a0   :  { %935 = vadd.xlane.f32.xlu0 %v934_v44  ;;  %v943_v47 = vsel %vm933_vm2, %v904_v43, 0.0 }
 0x2a1   :  { %v1371_v24 = vpop.f32.mrb[20].mxu0  ;;  %v937_v50 = vsel %vm933_vm2, %v902_v57, 0.0 }
 0x2a2   :  { %v1800_v45 = vadd.f32 %v1371_v24, %v1775_v32  ;;  %v790_v46 = vpop.f32.mrb[21].mxu0 }
 0x2a3   :  { %v1804_v48 = vadd.f32 %v1775_v32, %v790_v46  ;;  %944 = vadd.xlane.f32.xlu1 %v943_v47  ;;  %v1372_v49 = vpop.f32.mrb[22].mxu0 }
 0x2a4   :  { %v1808_v51 = vadd.f32 %v1372_v49, %v1775_v32  ;;  %v793_v52 = vpop.f32.mrb[23].mxu0  ;;  %938 = vadd.xlane.f32.xlu0 %v937_v50  ;;  %v907_v53 = vmul.f32 %v1800_v45, %v1800_v45 }
 0x2a5   :  { %v1813_v54 = vadd.f32 %v1775_v32, %v793_v52  ;;  %v905_v58 = vmul.f32 %v1804_v48, %v1804_v48 }
 0x2a6   :  { %v952_v55 = vsel %vm933_vm2, %v907_v53, 0.0  ;;  %v908_v56 = vmul.f32 %v1808_v51, %v1808_v51 }
 0x2a7   :  { %v906_v60 = vmul.f32 %v1813_v54, %v1813_v54  ;;  %v946_v2 = vsel %vm933_vm2, %v905_v58, 0.0 }
 0x2a8   :  { %953 = vadd.xlane.f32.xlu0 %v952_v55  ;;  %v955_v59 = vsel %vm933_vm2, %v908_v56, 0.0 }
 0x2a9   :  { %956 = vadd.xlane.f32.xlu1 %v955_v59  ;;  %v1375_v61 = vpop.f32.mrb[24].mxu0  ;;  %v949_v5 = vsel %vm933_vm2, %v906_v60, 0.0 }
 0x2aa   :  { %v1824_v62 = vadd.f32 %v1375_v61, %v1775_v32  ;;  %v806_v63 = vpop.f32.mrb[25].mxu0 }
 0x2ab   :  { %v1827_v0 = vadd.f32 %v1775_v32, %v806_v63  ;;  %v1376_v1 = vpop.f32.mrb[26].mxu0 }
 0x2ac   :  { %v1831_v3 = vadd.f32 %v1376_v1, %v1775_v32  ;;  %v809_v4 = vpop.f32.mrb[27].mxu0  ;;  %947 = vadd.xlane.f32.xlu0 %v946_v2  ;;  %v911_v6 = vmul.f32 %v1824_v62, %v1824_v62 }
 0x2ad   :  { %v1837_v7 = vadd.f32 %v1775_v32, %v809_v4  ;;  %950 = vadd.xlane.f32.xlu1 %v949_v5  ;;  %v909_v10 = vmul.f32 %v1827_v0, %v1827_v0 }
 0x2ae   :  { %v964_v8 = vsel %vm933_vm2, %v911_v6, 0.0  ;;  %v912_v9 = vmul.f32 %v1831_v3, %v1831_v3 }
 0x2af   :  { %v910_v12 = vmul.f32 %v1837_v7, %v1837_v7  ;;  %v958_v18 = vsel %vm933_vm2, %v909_v10, 0.0 }
 0x2b0   :  { %965 = vadd.xlane.f32.xlu0 %v964_v8  ;;  %v967_v11 = vsel %vm933_vm2, %v912_v9, 0.0 }
 0x2b1   :  { %v1379_v13 = vpop.f32.mrb[28].mxu0  ;;  %968 = vadd.xlane.f32.xlu1 %v967_v11  ;;  %v961_v22 = vsel %vm933_vm2, %v910_v12, 0.0 }
 0x2b2   :  { %v1848_v14 = vadd.f32 %v1379_v13, %v1775_v32  ;;  %v822_v15 = vpop.f32.mrb[29].mxu0 }
 0x2b3   :  { %v1851_v16 = vadd.f32 %v1775_v32, %v822_v15  ;;  %v1380_v17 = vpop.f32.mrb[30].mxu0 }
 0x2b4   :  { %v1855_v19 = vadd.f32 %v1380_v17, %v1775_v32  ;;  %v825_v20 = vpop.f32.mrb[31].mxu0  ;;  %959 = vadd.xlane.f32.xlu0 %v958_v18  ;;  %v915_v23 = vmul.f32 %v1848_v14, %v1848_v14 }
 0x2b5   :  { %v1861_v25 = vadd.f32 %v1775_v32, %v825_v20  ;;  %962 = vadd.xlane.f32.xlu1 %v961_v22  ;;  %v913_v28 = vmul.f32 %v1851_v16, %v1851_v16 }
 0x2b6   :  { %v976_v26 = vsel %vm933_vm2, %v915_v23, 0.0  ;;  %v916_v27 = vmul.f32 %v1855_v19, %v1855_v19 }
 0x2b7   :  { %v914_v30 = vmul.f32 %v1861_v25, %v1861_v25  ;;  %v970_v39 = vsel %vm933_vm2, %v913_v28, 0.0 }
 0x2b8   :  { %977 = vadd.xlane.f32.xlu0 %v976_v26  ;;  %v979_v29 = vsel %vm933_vm2, %v916_v27, 0.0 }
 0x2b9   :  { %v1383_v31 = vpop.f32.mrb[32].mxu0  ;;  %980 = vadd.xlane.f32.xlu1 %v979_v29  ;;  %v973_v43 = vsel %vm933_vm2, %v914_v30, 0.0 }
 0x2ba   :  { %v1872_v33 = vadd.f32 %v1383_v31, %v1775_v32  ;;  %v838_v21 = vpop.f32.mrb[33].mxu0 }
 0x2bb   :  { %v1875_v36 = vadd.f32 %v1775_v32, %v838_v21  ;;  %v1384_v38 = vpop.f32.mrb[34].mxu0 }
 0x2bc   :  { %v1879_v41 = vadd.f32 %v1384_v38, %v1775_v32  ;;  %v841_v42 = vpop.f32.mrb[35].mxu0  ;;  %971 = vadd.xlane.f32.xlu0 %v970_v39  ;;  %v919_v44 = vmul.f32 %v1872_v33, %v1872_v33 }
 0x2bd   :  { %v1885_v57 = vadd.f32 %v1775_v32, %v841_v42  ;;  %974 = vadd.xlane.f32.xlu1 %v973_v43  ;;  %v917_v47 = vmul.f32 %v1875_v36, %v1875_v36 }
 0x2be   :  { %v988_v24 = vsel %vm933_vm2, %v919_v44, 0.0  ;;  %v920_v46 = vmul.f32 %v1879_v41, %v1879_v41 }
 0x2bf   :  { %v918_v50 = vmul.f32 %v1885_v57, %v1885_v57  ;;  %v982_v59 = vsel %vm933_vm2, %v917_v47, 0.0 }
 0x2c0   :  { %989 = vadd.xlane.f32.xlu0 %v988_v24  ;;  %v991_v49 = vsel %vm933_vm2, %v920_v46, 0.0 }
 0x2c1   :  { %v1387_v52 = vpop.f32.mrb[36].mxu0  ;;  %992 = vadd.xlane.f32.xlu1 %v991_v49  ;;  %v985_v63 = vsel %vm933_vm2, %v918_v50, 0.0 }
 0x2c2   :  { %v1896_v53 = vadd.f32 %v1387_v52, %v1775_v32  ;;  %v854_v55 = vpop.f32.mrb[37].mxu0 }
 0x2c3   :  { %v1899_v56 = vadd.f32 %v1775_v32, %v854_v55  ;;  %v1388_v58 = vpop.f32.mrb[38].mxu0 }
 0x2c4   :  { %v1903_v60 = vadd.f32 %v1388_v58, %v1775_v32  ;;  %v857_v61 = vpop.f32.mrb[39].mxu0  ;;  %983 = vadd.xlane.f32.xlu0 %v982_v59  ;;  %v923_v1 = vmul.f32 %v1896_v53, %v1896_v53 }
 0x2c5   :  { %v1909_v2 = vadd.f32 %v1775_v32, %v857_v61  ;;  %986 = vadd.xlane.f32.xlu1 %v985_v63  ;;  %v921_v6 = vmul.f32 %v1899_v56, %v1899_v56 }
 0x2c6   :  { %v1000_v4 = vsel %vm933_vm2, %v923_v1, 0.0  ;;  %v924_v5 = vmul.f32 %v1903_v60, %v1903_v60 }
 0x2c7   :  { %v922_v9 = vmul.f32 %v1909_v2, %v1909_v2  ;;  %v994_v17 = vsel %vm933_vm2, %v921_v6, 0.0 }
 0x2c8   :  { %1001 = vadd.xlane.f32.xlu0 %v1000_v4  ;;  %v1003_v8 = vsel %vm933_vm2, %v924_v5, 0.0 }
 0x2c9   :  { %v1391_v10 = vpop.f32.mrb[40].mxu0  ;;  %1004 = vadd.xlane.f32.xlu1 %v1003_v8  ;;  %v997_v22 = vsel %vm933_vm2, %v922_v9, 0.0 }
 0x2ca   :  { %v1920_v11 = vadd.f32 %v1391_v10, %v1775_v32  ;;  %v870_v12 = vpop.f32.mrb[41].mxu0 }
 0x2cb   :  { %v1923_v13 = vadd.f32 %v1775_v32, %v870_v12  ;;  %v1392_v15 = vpop.f32.mrb[42].mxu0 }
 0x2cc   :  { %v1927_v18 = vadd.f32 %v1392_v15, %v1775_v32  ;;  %v873_v20 = vpop.f32.mrb[43].mxu0  ;;  %995 = vadd.xlane.f32.xlu0 %v994_v17  ;;  %v927_v23 = vmul.f32 %v1920_v11, %v1920_v11 }
 0x2cd   :  { %v1933_v26 = vadd.f32 %v1775_v32, %v873_v20  ;;  %998 = vadd.xlane.f32.xlu1 %v997_v22  ;;  %v925_v29 = vmul.f32 %v1923_v13, %v1923_v13 }
 0x2ce   :  { %v1012_v27 = vsel %vm933_vm2, %v927_v23, 0.0  ;;  %v928_v28 = vmul.f32 %v1927_v18, %v1927_v18 }
 0x2cf   :  { %v926_v31 = vmul.f32 %v1933_v26, %v1933_v26  ;;  %v1006_v44 = vsel %vm933_vm2, %v925_v29, 0.0 }
 0x2d0   :  { %1013 = vadd.xlane.f32.xlu0 %v1012_v27  ;;  %v1015_v30 = vsel %vm933_vm2, %v928_v28, 0.0 }
 0x2d1   :  { %v1395_v21 = vpop.f32.mrb[44].mxu0  ;;  %1016 = vadd.xlane.f32.xlu1 %v1015_v30  ;;  %v1009_v46 = vsel %vm933_vm2, %v926_v31, 0.0 }
 0x2d2   :  { %v886_v38 = vpop.f32.mrb[45].mxu0  ;;  %v1944_v39 = vadd.f32 %v1395_v21, %v1775_v32 }
 0x2d3   :  { %v1947_v42 = vadd.f32 %v1775_v32, %v886_v38  ;;  %v1396_v43 = vpop.f32.mrb[46].mxu0 }
 0x2d4   :  { %v889_v24 = vpop.f32.mrb[47].mxu0  ;;  %1007 = vadd.xlane.f32.xlu0 %v1006_v44  ;;  %v1952_v47 = vadd.f32 %v1396_v43, %v1775_v32  ;;  %v931_v58 = vmul.f32 %v1944_v39, %v1944_v39 }
 0x2d5   :  { %v1955_v49 = vadd.f32 %v1775_v32, %v889_v24  ;;  %1010 = vadd.xlane.f32.xlu1 %v1009_v46  ;;  %v929_v50 = vmul.f32 %v1947_v42, %v1947_v42 }
 0x2d6   :  { %v932_v61 = vmul.f32 %v1952_v47, %v1952_v47  ;;  %v1024_v32 = vsel %vm933_vm2, %v931_v58, 0.0 }
 0x2d7   :  { %v1018_v52 = vsel %vm933_vm2, %v929_v50, 0.0  ;;  %v930_v55 = vmul.f32 %v1955_v49, %v1955_v49 }
 0x2d8   :  { %1019 = vadd.xlane.f32.xlu0 %v1018_v52  ;;  %v1027_v63 = vsel %vm933_vm2, %v932_v61, 0.0 }
 0x2d9   :  { %v1021_v59 = vsel %vm933_vm2, %v930_v55, 0.0 }
 0x2da   :  { %1022 = vadd.xlane.f32.xlu1 %v1021_v59 }
 0x2dc   :  { %1025 = vadd.xlane.f32.xlu0 %v1024_v32 }
 0x2de   :  { %1028 = vadd.xlane.f32.xlu1 %v1027_v63 }
 0x32c   :  { %v942_v1 = vpop.xlane.xlu1 %941 }
 0x32d   :  { %v1032_v4 = vmax.f32 %v942_v1, 1e-24  ;;  %v936_v5 = vpop.xlane.xlu0 %935 }
 0x32e   :  { %v1030_v6 = vmax.f32 %v936_v5, 1e-24 }
 0x32f   :  { %1411 = vrsqrt.f32 %v1032_v4 }
 0x330   :  { %1413 = vrsqrt.f32 %v1030_v6  ;;  %v945_v8 = vpop.xlane.xlu1 %944 }
 0x331   :  { %v1033_v9 = vmax.f32 %v945_v8, 1e-24  ;;  %v939_v10 = vpop.xlane.xlu0 %938 }
 0x332   :  { %v1031_v12 = vmax.f32 %v939_v10, 1e-24 }
 0x333   :  { %1415 = vrsqrt.f32 %v1033_v9 }
 0x334   :  { %1417 = vrsqrt.f32 %v1031_v12 }
 0x335   :  { %v954_v15 = vpop.xlane.xlu0 %953 }
 0x336   :  { %v1036_v17 = vmax.f32 %v954_v15, 1e-24  ;;  %v957_v20 = vpop.xlane.xlu1 %956 }
 0x337   :  { %v1037_v22 = vmax.f32 %v957_v20, 1e-24 }
 0x338   :  { %1419 = vrsqrt.f32 %v1036_v17 }
 0x339   :  { %v1412_v23 = vpop.eup %1411  ;;  %1421 = vrsqrt.f32 %v1037_v22  ;;  %v948_v27 = vpop.xlane.xlu0 %947 }
 0x33a   :  { %v1414_v28 = vpop.eup %1413  ;;  %v1096_v29 = vmul.f32 %v1412_v23, %v1778_v34  ;;  %v1034_v30 = vmax.f32 %v948_v27, 1e-24  ;;  %v951_v31 = vpop.xlane.xlu1 %950 }
 0x33b   :  { %v1094_v21 = vmul.f32 %v1414_v28, %v1781_v35  ;;  %v1035_v38 = vmax.f32 %v951_v31, 1e-24 }
 0x33c   :  { %1128 = vst.msk [vmem:[%s2136_s7 + $0x10] sm:$0xff] %vm933_vm2, %v1096_v29  ;;  %1423 = vrsqrt.f32 %v1034_v30 }
 0x33d   :  { %v1416_v43 = vpop.eup %1415  ;;  %1126 = vst.msk [vmem:[%s2136_s7] sm:$0xff] %vm933_vm2, %v1094_v21  ;;  %1425 = vrsqrt.f32 %v1035_v38  ;;  %v966_v44 = vpop.xlane.xlu0 %965 }
 0x33e   :  { %v1418_v34 = vpop.eup %1417  ;;  %v1097_v24 = vmul.f32 %v1416_v43, %v1784_v37  ;;  %v1040_v46 = vmax.f32 %v966_v44, 1e-24  ;;  %v969_v35 = vpop.xlane.xlu1 %968 }
 0x33f   :  { %v1095_v50 = vmul.f32 %v1418_v34, %v1789_v40  ;;  %v1041_v52 = vmax.f32 %v969_v35, 1e-24 }
 0x340   :  { %1129 = vst.msk [vmem:[%s2136_s7 + $0x18] sm:$0xff] %vm933_vm2, %v1097_v24  ;;  %1427 = vrsqrt.f32 %v1040_v46 }
 0x341   :  { %1127 = vst.msk [vmem:[%s2136_s7 + $0x8] sm:$0xff] %vm933_vm2, %v1095_v50  ;;  %1429 = vrsqrt.f32 %v1041_v52  ;;  %v960_v55 = vpop.xlane.xlu0 %959 }
 0x342   :  { %v1420_v58 = vpop.eup %1419  ;;  %v1038_v37 = vmax.f32 %v960_v55, 1e-24  ;;  %v963_v59 = vpop.xlane.xlu1 %962 }
 0x343   :  { %v1422_v61 = vpop.eup %1421  ;;  %v1100_v40 = vmul.f32 %v1420_v58, %v1800_v45  ;;  %v1039_v32 = vmax.f32 %v963_v59, 1e-24 }
 0x344   :  { %v1101_v63 = vmul.f32 %v1422_v61, %v1808_v51  ;;  %1431 = vrsqrt.f32 %v1038_v37 }
 0x345   :  { %1132 = vst.msk [vmem:[%s2136_s7 + $0x30] sm:$0xff] %vm933_vm2, %v1100_v40  ;;  %1433 = vrsqrt.f32 %v1039_v32  ;;  %v978_v1 = vpop.xlane.xlu0 %977 }
 0x346   :  { %v1424_v4 = vpop.eup %1423  ;;  %1133 = vst.msk [vmem:[%s2136_s7 + $0x38] sm:$0xff] %vm933_vm2, %v1101_v63  ;;  %v1044_v5 = vmax.f32 %v978_v1, 1e-24  ;;  %v981_v6 = vpop.xlane.xlu1 %980 }
 0x347   :  { %v1426_v45 = vpop.eup %1425  ;;  %v1098_v8 = vmul.f32 %v1424_v4, %v1804_v48  ;;  %v1045_v51 = vmax.f32 %v981_v6, 1e-24 }
 0x348   :  { %v1099_v9 = vmul.f32 %v1426_v45, %v1813_v54  ;;  %1435 = vrsqrt.f32 %v1044_v5 }
 0x349   :  { %1130 = vst.msk [vmem:[%s2136_s7 + $0x20] sm:$0xff] %vm933_vm2, %v1098_v8  ;;  %1437 = vrsqrt.f32 %v1045_v51  ;;  %v972_v10 = vpop.xlane.xlu0 %971 }
 0x34a   :  { %v1428_v12 = vpop.eup %1427  ;;  %1131 = vst.msk [vmem:[%s2136_s7 + $0x28] sm:$0xff] %vm933_vm2, %v1099_v9  ;;  %v1042_v15 = vmax.f32 %v972_v10, 1e-24  ;;  %v975_v17 = vpop.xlane.xlu1 %974 }
 0x34b   :  { %v1430_v48 = vpop.eup %1429  ;;  %v1104_v20 = vmul.f32 %v1428_v12, %v1824_v62  ;;  %v1043_v54 = vmax.f32 %v975_v17, 1e-24 }
 0x34c   :  { %v1105_v22 = vmul.f32 %v1430_v48, %v1831_v3  ;;  %1439 = vrsqrt.f32 %v1042_v15 }
 0x34d   :  { %1136 = vst.msk [vmem:[%s2136_s7 + $0x50] sm:$0xff] %vm933_vm2, %v1104_v20  ;;  %1441 = vrsqrt.f32 %v1043_v54  ;;  %v990_v23 = vpop.xlane.xlu0 %989 }
 0x34e   :  { %v1432_v27 = vpop.eup %1431  ;;  %1137 = vst.msk [vmem:[%s2136_s7 + $0x58] sm:$0xff] %vm933_vm2, %v1105_v22  ;;  %v1048_v28 = vmax.f32 %v990_v23, 1e-24  ;;  %v993_v29 = vpop.xlane.xlu1 %992 }
 0x34f   :  { %v1434_v62 = vpop.eup %1433  ;;  %v1102_v30 = vmul.f32 %v1432_v27, %v1827_v0  ;;  %v1049_v3 = vmax.f32 %v993_v29, 1e-24 }
 0x350   :  { %v1103_v31 = vmul.f32 %v1434_v62, %v1837_v7  ;;  %1443 = vrsqrt.f32 %v1048_v28 }
 0x351   :  { %1134 = vst.msk [vmem:[%s2136_s7 + $0x40] sm:$0xff] %vm933_vm2, %v1102_v30  ;;  %1445 = vrsqrt.f32 %v1049_v3  ;;  %v984_v21 = vpop.xlane.xlu0 %983 }
 0x352   :  { %v1436_v38 = vpop.eup %1435  ;;  %1135 = vst.msk [vmem:[%s2136_s7 + $0x48] sm:$0xff] %vm933_vm2, %v1103_v31  ;;  %v1046_v43 = vmax.f32 %v984_v21, 1e-24  ;;  %v987_v44 = vpop.xlane.xlu1 %986 }
 0x353   :  { %v1438_v0 = vpop.eup %1437  ;;  %v1108_v34 = vmul.f32 %v1436_v38, %v1848_v14  ;;  %v1047_v7 = vmax.f32 %v987_v44, 1e-24 }
 0x354   :  { %v1109_v24 = vmul.f32 %v1438_v0, %v1855_v19  ;;  %1447 = vrsqrt.f32 %v1046_v43 }
 0x355   :  { %1140 = vst.msk [vmem:[%s2136_s7 + $0x70] sm:$0xff] %vm933_vm2, %v1108_v34  ;;  %1449 = vrsqrt.f32 %v1047_v7  ;;  %v1002_v46 = vpop.xlane.xlu0 %1001 }
 0x356   :  { %v1440_v35 = vpop.eup %1439  ;;  %1141 = vst.msk [vmem:[%s2136_s7 + $0x78] sm:$0xff] %vm933_vm2, %v1109_v24  ;;  %v1052_v50 = vmax.f32 %v1002_v46, 1e-24  ;;  %v1005_v52 = vpop.xlane.xlu1 %1004 }
 0x357   :  { %v1442_v14 = vpop.eup %1441  ;;  %v1106_v55 = vmul.f32 %v1440_v35, %v1851_v16  ;;  %v1053_v19 = vmax.f32 %v1005_v52, 1e-24 }
 0x358   :  { %v1107_v58 = vmul.f32 %v1442_v14, %v1861_v25  ;;  %1451 = vrsqrt.f32 %v1052_v50 }
 0x359   :  { %1138 = vst.msk [vmem:[%s2136_s7 + $0x60] sm:$0xff] %vm933_vm2, %v1106_v55  ;;  %1453 = vrsqrt.f32 %v1053_v19  ;;  %v996_v37 = vpop.xlane.xlu0 %995 }
 0x35a   :  { %v1444_v59 = vpop.eup %1443  ;;  %1139 = vst.msk [vmem:[%s2136_s7 + $0x68] sm:$0xff] %vm933_vm2, %v1107_v58  ;;  %v1050_v61 = vmax.f32 %v996_v37, 1e-24  ;;  %v999_v40 = vpop.xlane.xlu1 %998 }
 0x35b   :  { %v1446_v16 = vpop.eup %1445  ;;  %v1112_v32 = vmul.f32 %v1444_v59, %v1872_v33  ;;  %v1051_v25 = vmax.f32 %v999_v40, 1e-24 }
 0x35c   :  { %v1113_v63 = vmul.f32 %v1446_v16, %v1879_v41  ;;  %1455 = vrsqrt.f32 %v1050_v61 }
 0x35d   :  { %1144 = vst.msk [vmem:[%s2136_s7 + $0x90] sm:$0xff] %vm933_vm2, %v1112_v32  ;;  %1457 = vrsqrt.f32 %v1051_v25  ;;  %v1014_v1 = vpop.xlane.xlu0 %1013 }
 0x35e   :  { %v1448_v4 = vpop.eup %1447  ;;  %1145 = vst.msk [vmem:[%s2136_s7 + $0x98] sm:$0xff] %vm933_vm2, %v1113_v63  ;;  %v1056_v5 = vmax.f32 %v1014_v1, 1e-24  ;;  %v1017_v6 = vpop.xlane.xlu1 %1016 }
 0x35f   :  { %v1450_v33 = vpop.eup %1449  ;;  %v1110_v45 = vmul.f32 %v1448_v4, %v1875_v36  ;;  %v1057_v41 = vmax.f32 %v1017_v6, 1e-24 }
 0x360   :  { %v1111_v8 = vmul.f32 %v1450_v33, %v1885_v57  ;;  %1459 = vrsqrt.f32 %v1056_v5 }
 0x361   :  { %1142 = vst.msk [vmem:[%s2136_s7 + $0x80] sm:$0xff] %vm933_vm2, %v1110_v45  ;;  %1461 = vrsqrt.f32 %v1057_v41  ;;  %v1008_v51 = vpop.xlane.xlu0 %1007 }
 0x362   :  { %v1452_v9 = vpop.eup %1451  ;;  %1143 = vst.msk [vmem:[%s2136_s7 + $0x88] sm:$0xff] %vm933_vm2, %v1111_v8  ;;  %v1054_v10 = vmax.f32 %v1008_v51, 1e-24  ;;  %v1011_v12 = vpop.xlane.xlu1 %1010 }
 0x363   :  { %v1454_v36 = vpop.eup %1453  ;;  %v1116_v15 = vmul.f32 %v1452_v9, %v1896_v53  ;;  %v1055_v57 = vmax.f32 %v1011_v12, 1e-24 }
 0x364   :  { %v1117_v17 = vmul.f32 %v1454_v36, %v1903_v60  ;;  %1463 = vrsqrt.f32 %v1054_v10 }
 0x365   :  { %1148 = vst.msk [vmem:[%s2136_s7 + $0xb0] sm:$0xff] %vm933_vm2, %v1116_v15  ;;  %1465 = vrsqrt.f32 %v1055_v57  ;;  %v1020_v48 = vpop.xlane.xlu0 %1019 }
 0x366   :  { %v1456_v20 = vpop.eup %1455  ;;  %1149 = vst.msk [vmem:[%s2136_s7 + $0xb8] sm:$0xff] %vm933_vm2, %v1117_v17  ;;  %v1058_v54 = vmax.f32 %v1020_v48, 1e-24 }
 0x367   :  { %v1458_v22 = vpop.eup %1457  ;;  %v1114_v53 = vmul.f32 %v1456_v20, %v1899_v56  ;;  %v1023_v23 = vpop.xlane.xlu1 %1022 }
 0x368   :  { %v1115_v60 = vmul.f32 %v1458_v22, %v1909_v2  ;;  %1467 = vrsqrt.f32 %v1058_v54  ;;  %v1059_v27 = vmax.f32 %v1023_v23, 1e-24 }
 0x369   :  { %1146 = vst.msk [vmem:[%s2136_s7 + $0xa0] sm:$0xff] %vm933_vm2, %v1114_v53  ;;  %v1026_v28 = vpop.xlane.xlu0 %1025 }
 0x36a   :  { %v1460_v29 = vpop.eup %1459  ;;  %1147 = vst.msk [vmem:[%s2136_s7 + $0xa8] sm:$0xff] %vm933_vm2, %v1115_v60  ;;  %1469 = vrsqrt.f32 %v1059_v27  ;;  %v1060_v62 = vmax.f32 %v1026_v28, 1e-24 }
 0x36b   :  { %v1462_v56 = vpop.eup %1461  ;;  %v1120_v30 = vmul.f32 %v1460_v29, %v1920_v11  ;;  %v1029_v2 = vpop.xlane.xlu1 %1028 }
 0x36c   :  { %v1121_v3 = vmul.f32 %v1462_v56, %v1927_v18  ;;  %1471 = vrsqrt.f32 %v1060_v62  ;;  %v1061_v31 = vmax.f32 %v1029_v2, 1e-24 }
 0x36d   :  { %1152 = vst.msk [vmem:[%s2136_s7 + $0xd0] sm:$0xff] %vm933_vm2, %v1120_v30 }
 0x36e   :  { %v1464_v21 = vpop.eup %1463  ;;  %1153 = vst.msk [vmem:[%s2136_s7 + $0xd8] sm:$0xff] %vm933_vm2, %v1121_v3  ;;  %1473 = vrsqrt.f32 %v1061_v31 }
 0x36f   :  { %v1466_v38 = vpop.eup %1465  ;;  %v1118_v11 = vmul.f32 %v1464_v21, %v1923_v13 }
 0x370   :  { %v1119_v43 = vmul.f32 %v1466_v38, %v1933_v26 }
 0x371   :  { %1150 = vst.msk [vmem:[%s2136_s7 + $0xc0] sm:$0xff] %vm933_vm2, %v1118_v11 }
 0x372   :  { %v1468_v18 = vpop.eup %1467  ;;  %1151 = vst.msk [vmem:[%s2136_s7 + $0xc8] sm:$0xff] %vm933_vm2, %v1119_v43 }
 0x373   :  { %v1122_v44 = vmul.f32 %v1468_v18, %v1947_v42 }
 0x374   :  { %v1470_v0 = vpop.eup %1469 }
 0x375   :  { %1154 = vst.msk [vmem:[%s2136_s7 + $0xe0] sm:$0xff] %vm933_vm2, %v1122_v44  ;;  %v1123_v13 = vmul.f32 %v1470_v0, %v1955_v49 }
 0x376   :  { %v1472_v26 = vpop.eup %1471 }
 0x377   :  { %1155 = vst.msk [vmem:[%s2136_s7 + $0xe8] sm:$0xff] %vm933_vm2, %v1123_v13  ;;  %v1124_v34 = vmul.f32 %v1472_v26, %v1944_v39 }
 0x378   :  { %v1474_v7 = vpop.eup %1473 }
 0x379   :  { %1156 = vst.msk [vmem:[%s2136_s7 + $0xf0] sm:$0xff] %vm933_vm2, %v1124_v34  ;;  %v1125_v42 = vmul.f32 %v1474_v7, %v1952_v47 }
 0x37b   :  { %1157 = vst.msk [vmem:[%s2136_s7 + $0xf8] sm:$0xff] %vm933_vm2, %v1125_v42 }

</bundles_post_ra>
